<compile_context>
chip_gen: v5e
topology: v5e:2x2
jax: 0.10.0
libtpu: 0.0.40
codegen_flags: <defaults>
</compile_context>

<pallas_src>
import jax
import jax.numpy as jnp
from jax.experimental import pallas as pl
from jax.experimental.pallas import tpu as pltpu

# ---- model dims (small, consistent with the module's forward) ----
B, T, E = 2, 16, 32          # batch, sequence, embed_dim
BT = B * T
NUM_HEADS = 4
HEAD_DIM = E // NUM_HEADS
FFN = 64                     # encoder_ffn_dim
SCALING = HEAD_DIM ** -0.5
EPS = 1e-5                   # nn.LayerNorm default eps
_INV_SQRT2 = 0.7071067811865476
LANES = 128

# Deliberate (documented) deviation: approximate reciprocal in the softmax
# denominator (~1e-4 relative error, well inside the 1e-3 tolerance).
SOFTMAX_APPROX_RECIPROCAL = True

# ---- packed parameter slab layout (rows x 128 lanes, f32) ----
ROW_QKV = 0                  # rows [0, E):        cols [0,3E) qkv_w, [3E,4E) o_w
ROW_FC1 = E                  # rows [E, 2E):       cols [0,FFN) fc1_w
ROW_FC2 = 2 * E              # rows [2E, 2E+FFN):  cols [0,E)   fc2_w
ROW_VEC = 2 * E + FFN        # rows [ROW_VEC, ROW_VEC+8): packed LN/bias vectors
SLAB_ROWS = ROW_VEC + 8      # 136 (multiple of 8)

# vec rows (each vector starts at lane 0 of its row)
_R_LN1G, _R_LN1B, _R_LN2G, _R_LN2B, _R_OB, _R_FC2B, _R_FC1B, _R_QKVB = range(8)


def _layer_norm(x, g, b):
    mu = jnp.mean(x, axis=-1, keepdims=True)
    var = jnp.mean((x - mu) ** 2, axis=-1, keepdims=True)
    return (x - mu) * jax.lax.rsqrt(var + EPS) * g + b


def _gelu_exact(x):
    # Whisper activation_fn "gelu" == exact (erf) GELU
    return 0.5 * x * (1.0 + jax.lax.erf(x * _INV_SQRT2))


def encoder_layer_kernel(x_ref, p_ref, o_ref):
    x = x_ref[...]                                          # (BT, E)

    # ---- parameter views straight off the Ref (static slices) ----
    qkv_w = p_ref[ROW_QKV:ROW_QKV + E, 0:3 * E]             # (E, 3E)
    o_w = p_ref[ROW_QKV:ROW_QKV + E, 3 * E:4 * E]           # (E, E)
    fc1_w = p_ref[ROW_FC1:ROW_FC1 + E, 0:FFN]               # (E, FFN)
    fc2_w = p_ref[ROW_FC2:ROW_FC2 + FFN, 0:E]               # (FFN, E)

    def vec(r, n):
        return p_ref[ROW_VEC + r:ROW_VEC + r + 1, 0:n]      # (1, n)

    ln1_g, ln1_b = vec(_R_LN1G, E), vec(_R_LN1B, E)
    ln2_g, ln2_b = vec(_R_LN2G, E), vec(_R_LN2B, E)
    o_b, fc2_b = vec(_R_OB, E), vec(_R_FC2B, E)
    fc1_b = vec(_R_FC1B, FFN)
    qkv_b = vec(_R_QKVB, 3 * E)

    # ---- self_attn_layer_norm ----
    h = _layer_norm(x, ln1_g, ln1_b)

    # ---- fused q/k/v projection (attention scaling folded into q cols) ----
    qkv = jnp.dot(h, qkv_w, preferred_element_type=jnp.float32) + qkv_b
    qkv3 = qkv.reshape(B, T, 3 * E)

    # ---- SHA attention: per-head softmax(q k^T) v, heads concatenated ----
    ctx_heads = []
    for hd in range(NUM_HEADS):
        s0 = hd * HEAD_DIM
        qh = qkv3[:, :, s0:s0 + HEAD_DIM]                           # (B, T, d)
        kh = qkv3[:, :, E + s0:E + s0 + HEAD_DIM]                   # (B, T, d)
        vh = qkv3[:, :, 2 * E + s0:2 * E + s0 + HEAD_DIM]           # (B, T, d)
        sc = jnp.einsum("btd,bsd->bts", qh, kh,
                        preferred_element_type=jnp.float32)         # (B, T, T)
        sc = sc - jnp.max(sc, axis=-1, keepdims=True)
        p = jnp.exp(sc)
        denom = jnp.sum(p, axis=-1, keepdims=True)
        if SOFTMAX_APPROX_RECIPROCAL:
            p = p * pl.reciprocal(denom, approx=True)
        else:
            p = p / denom
        ctx = jnp.einsum("bts,bsd->btd", p, vh,
                         preferred_element_type=jnp.float32)        # (B, T, d)
        ctx_heads.append(ctx.reshape(BT, HEAD_DIM))

    # single out_proj matmul (K = E), exactly torch.cat(heads) @ out_proj
    attn = jnp.concatenate(ctx_heads, axis=-1)                      # (BT, E)
    attn = jnp.dot(attn, o_w, preferred_element_type=jnp.float32) + o_b

    h1 = x + attn                                                   # residual

    # ---- final_layer_norm + MLP (fc1 -> exact GELU -> fc2) ----
    h2 = _layer_norm(h1, ln2_g, ln2_b)
    f = jnp.dot(h2, fc1_w, preferred_element_type=jnp.float32) + fc1_b
    f = _gelu_exact(f)
    f = jnp.dot(f, fc2_w, preferred_element_type=jnp.float32) + fc2_b

    o_ref[...] = h1 + f                                             # residual


def _pack_params(p):
    """Fold scaling into q, fuse q|k|v, pack EVERYTHING into one (136,128) slab."""
    qkv_w = jnp.concatenate(
        [p["q_w"] * SCALING, p["k_w"], p["v_w"]], axis=1)            # (E, 3E)
    qkv_b = jnp.concatenate(
        [p["q_b"] * SCALING, jnp.zeros((E,), jnp.float32), p["v_b"]])  # (3E,)

    slab = jnp.zeros((SLAB_ROWS, LANES), jnp.float32)
    slab = slab.at[ROW_QKV:ROW_QKV + E, 0:3 * E].set(qkv_w)
    slab = slab.at[ROW_QKV:ROW_QKV + E, 3 * E:4 * E].set(p["o_w"])
    slab = slab.at[ROW_FC1:ROW_FC1 + E, 0:FFN].set(p["fc1_w"])
    slab = slab.at[ROW_FC2:ROW_FC2 + FFN, 0:E].set(p["fc2_w"])
    slab = slab.at[ROW_VEC + _R_LN1G, 0:E].set(p["ln1_g"])
    slab = slab.at[ROW_VEC + _R_LN1B, 0:E].set(p["ln1_b"])
    slab = slab.at[ROW_VEC + _R_LN2G, 0:E].set(p["ln2_g"])
    slab = slab.at[ROW_VEC + _R_LN2B, 0:E].set(p["ln2_b"])
    slab = slab.at[ROW_VEC + _R_OB, 0:E].set(p["o_b"])
    slab = slab.at[ROW_VEC + _R_FC2B, 0:E].set(p["fc2_b"])
    slab = slab.at[ROW_VEC + _R_FC1B, 0:FFN].set(p["fc1_b"])
    slab = slab.at[ROW_VEC + _R_QKVB, 0:3 * E].set(qkv_b)
    return slab


@jax.jit
def qc_whisper_encoder_layer(x, params):
    """x: (B, 1, T, E) float32 -> (B, 1, T, E) float32."""
    xf = x.reshape(BT, E)                 # drop conv-height dim, flatten batch
    slab = _pack_params(params)
    out = pl.pallas_call(
        encoder_layer_kernel,
        out_shape=jax.ShapeDtypeStruct((BT, E), jnp.float32),
        in_specs=[pl.BlockSpec(memory_space=pltpu.MemorySpace.VMEM),
                  pl.BlockSpec(memory_space=pltpu.MemorySpace.VMEM)],
        out_specs=pl.BlockSpec(memory_space=pltpu.MemorySpace.VMEM),
        input_output_aliases={0: 0},      # x fully consumed before final store
    )(xf, slab)
    return out.reshape(B, 1, T, E)


# ---------------- pure-JAX reference (mirrors the PyTorch math) ----------------
def reference(x, p):
    xs = x[:, 0]                                   # (B, T, E)
    h = _layer_norm(xs, p["ln1_g"], p["ln1_b"])
    q = (h @ p["q_w"] + p["q_b"]) * SCALING        # scaling folded, as in SHAAttention
    k = h @ p["k_w"]                               # k projection has no bias
    v = h @ p["v_w"] + p["v_b"]
    outs = []
    for hd in range(NUM_HEADS):
        sl = slice(hd * HEAD_DIM, (hd + 1) * HEAD_DIM)
        sc = jnp.einsum("btd,bsd->bts", q[..., sl], k[..., sl])
        w = jax.nn.softmax(sc, axis=-1)
        outs.append(jnp.einsum("bts,bsd->btd", w, v[..., sl]))
    attn = jnp.concatenate(outs, axis=-1) @ p["o_w"] + p["o_b"]
    h1 = xs + attn
    h2 = _layer_norm(h1, p["ln2_g"], p["ln2_b"])
    f = _gelu_exact(h2 @ p["fc1_w"] + p["fc1_b"])
    f = f @ p["fc2_w"] + p["fc2_b"]
    return (h1 + f)[:, None, :, :]


def make_params(key):
    ks = jax.random.split(key, 16)
    n = lambda k, shape, s=0.05: s * jax.random.normal(k, shape, dtype=jnp.float32)
    # projection weights stored as (in, out) matrices (1x1 Conv2d == matmul)
    params = {
        "ln1_g": jnp.ones((E,), jnp.float32) + n(ks[0], (E,), 0.01),
        "ln1_b": n(ks[1], (E,), 0.01),
        "q_w": n(ks[2], (E, E)), "q_b": n(ks[3], (E,), 0.02),
        "k_w": n(ks[4], (E, E)),
        "v_w": n(ks[5], (E, E)), "v_b": n(ks[6], (E,), 0.02),
        "o_w": n(ks[7], (E, E)), "o_b": n(ks[8], (E,), 0.02),
        "ln2_g": jnp.ones((E,), jnp.float32) + n(ks[9], (E,), 0.01),
        "ln2_b": n(ks[10], (E,), 0.01),
        "fc1_w": n(ks[11], (E, FFN)), "fc1_b": n(ks[12], (FFN,), 0.02),
        "fc2_w": n(ks[13], (FFN, E)), "fc2_b": n(ks[14], (E,), 0.02),
    }
    return params, ks[15]


if __name__ == "__main__":
    key = jax.random.PRNGKey(0)
    params, xkey = make_params(key)
    x = jax.random.normal(xkey, (B, 1, T, E), dtype=jnp.float32)

    out = qc_whisper_encoder_layer(x, params)
    out = jax.block_until_ready(out)

    ref = reference(x, params)
    assert out.shape == (B, 1, T, E)
    err = jnp.max(jnp.abs(out - ref))
    assert jnp.allclose(out, ref, atol=1e-3, rtol=1e-3), f"max abs err {err}"
    print("KERNEL_OK")
</pallas_src>

<mosaic_0001>
module attributes {stable_mosaic.version = 11 : i64} {
  func.func @encoder_layer_kernel(%arg0: memref<32x32xf32, #tpu.memory_space<vmem>>, %arg1: memref<136x128xf32, #tpu.memory_space<vmem>>, %arg2: memref<32x32xf32, #tpu.memory_space<vmem>>) attributes {dimension_semantics = [], scalar_prefetch = 0 : i64, scratch_operands = 0 : i64, tpu.core_type = #tpu.core_type<tc>} {
    %c0 = arith.constant 0 : index
    %c0_0 = arith.constant 0 : index
    %0 = vector.load %arg0[%c0, %c0_0] : memref<32x32xf32, #tpu.memory_space<vmem>>, vector<32x32xf32>
    %c0_1 = arith.constant 0 : index
    %c0_2 = arith.constant 0 : index
    %1 = vector.load %arg1[%c0_1, %c0_2] : memref<136x128xf32, #tpu.memory_space<vmem>>, vector<32x96xf32>
    %c0_3 = arith.constant 0 : index
    %c96 = arith.constant 96 : index
    %2 = vector.load %arg1[%c0_3, %c96] : memref<136x128xf32, #tpu.memory_space<vmem>>, vector<32x32xf32>
    %c32 = arith.constant 32 : index
    %c0_4 = arith.constant 0 : index
    %3 = vector.load %arg1[%c32, %c0_4] : memref<136x128xf32, #tpu.memory_space<vmem>>, vector<32x64xf32>
    %c64 = arith.constant 64 : index
    %c0_5 = arith.constant 0 : index
    %4 = vector.load %arg1[%c64, %c0_5] : memref<136x128xf32, #tpu.memory_space<vmem>>, vector<64x32xf32>
    %c128 = arith.constant 128 : index
    %c0_6 = arith.constant 0 : index
    %5 = vector.load %arg1[%c128, %c0_6] : memref<136x128xf32, #tpu.memory_space<vmem>>, vector<1x32xf32>
    %c129 = arith.constant 129 : index
    %c0_7 = arith.constant 0 : index
    %6 = vector.load %arg1[%c129, %c0_7] : memref<136x128xf32, #tpu.memory_space<vmem>>, vector<1x32xf32>
    %c130 = arith.constant 130 : index
    %c0_8 = arith.constant 0 : index
    %7 = vector.load %arg1[%c130, %c0_8] : memref<136x128xf32, #tpu.memory_space<vmem>>, vector<1x32xf32>
    %c131 = arith.constant 131 : index
    %c0_9 = arith.constant 0 : index
    %8 = vector.load %arg1[%c131, %c0_9] : memref<136x128xf32, #tpu.memory_space<vmem>>, vector<1x32xf32>
    %c132 = arith.constant 132 : index
    %c0_10 = arith.constant 0 : index
    %9 = vector.load %arg1[%c132, %c0_10] : memref<136x128xf32, #tpu.memory_space<vmem>>, vector<1x32xf32>
    %c133 = arith.constant 133 : index
    %c0_11 = arith.constant 0 : index
    %10 = vector.load %arg1[%c133, %c0_11] : memref<136x128xf32, #tpu.memory_space<vmem>>, vector<1x32xf32>
    %c134 = arith.constant 134 : index
    %c0_12 = arith.constant 0 : index
    %11 = vector.load %arg1[%c134, %c0_12] : memref<136x128xf32, #tpu.memory_space<vmem>>, vector<1x64xf32>
    %c135 = arith.constant 135 : index
    %c0_13 = arith.constant 0 : index
    %12 = vector.load %arg1[%c135, %c0_13] : memref<136x128xf32, #tpu.memory_space<vmem>>, vector<1x96xf32>
    %cst = arith.constant dense<0.000000e+00> : vector<32xf32>
    %13 = vector.multi_reduction <add>, %0, %cst [1] : vector<32x32xf32> to vector<32xf32>
    %14 = vector.shape_cast %13 : vector<32xf32> to vector<32x1xf32>
    %cst_14 = arith.constant 3.200000e+01 : f32
    %15 = vector.broadcast %cst_14 : f32 to vector<32x1xf32>
    %16 = arith.divf %14, %15 : vector<32x1xf32>
    %17 = vector.broadcast %16 : vector<32x1xf32> to vector<32x32xf32>
    %18 = arith.subf %0, %17 : vector<32x32xf32>
    %19 = arith.mulf %18, %18 : vector<32x32xf32>
    %cst_15 = arith.constant dense<0.000000e+00> : vector<32xf32>
    %20 = vector.multi_reduction <add>, %19, %cst_15 [1] : vector<32x32xf32> to vector<32xf32>
    %21 = vector.shape_cast %20 : vector<32xf32> to vector<32x1xf32>
    %cst_16 = arith.constant 3.200000e+01 : f32
    %22 = vector.broadcast %cst_16 : f32 to vector<32x1xf32>
    %23 = arith.divf %21, %22 : vector<32x1xf32>
    %24 = vector.broadcast %16 : vector<32x1xf32> to vector<32x32xf32>
    %25 = arith.subf %0, %24 : vector<32x32xf32>
    %cst_17 = arith.constant 9.99999974E-6 : f32
    %26 = vector.broadcast %cst_17 : f32 to vector<32x1xf32>
    %27 = arith.addf %23, %26 : vector<32x1xf32>
    %28 = math.rsqrt %27 : vector<32x1xf32>
    %29 = vector.broadcast %28 : vector<32x1xf32> to vector<32x32xf32>
    %30 = arith.mulf %25, %29 : vector<32x32xf32>
    %31 = vector.broadcast %5 : vector<1x32xf32> to vector<32x32xf32>
    %32 = arith.mulf %30, %31 : vector<32x32xf32>
    %33 = vector.broadcast %6 : vector<1x32xf32> to vector<32x32xf32>
    %34 = arith.addf %32, %33 : vector<32x32xf32>
    %cst_18 = arith.constant dense<0.000000e+00> : vector<32x96xf32>
    %35 = tpu.matmul %34, %1, %cst_18 {dimension_numbers = #tpu.dot_dimension_numbers<[1], [0], [0], [1], [0, 0, 1, 1], [], []>} : vector<32x32xf32>, vector<32x96xf32>, vector<32x96xf32> -> vector<32x96xf32>
    %36 = vector.broadcast %12 : vector<1x96xf32> to vector<32x96xf32>
    %37 = arith.addf %35, %36 : vector<32x96xf32>
    %38 = vector.shape_cast %37 : vector<32x96xf32> to vector<2x16x96xf32>
    %39 = vector.extract_strided_slice %38 {offsets = [0, 0, 0], sizes = [2, 16, 8], strides = [1, 1, 1]} : vector<2x16x96xf32> to vector<2x16x8xf32>
    %40 = vector.extract_strided_slice %38 {offsets = [0, 0, 32], sizes = [2, 16, 8], strides = [1, 1, 1]} : vector<2x16x96xf32> to vector<2x16x8xf32>
    %41 = vector.extract_strided_slice %38 {offsets = [0, 0, 64], sizes = [2, 16, 8], strides = [1, 1, 1]} : vector<2x16x96xf32> to vector<2x16x8xf32>
    "tpu.trace_start"() <{level = 10 : i32, message = "btd,bsd->bts"}> : () -> ()
    %cst_19 = arith.constant dense<0.000000e+00> : vector<2x16x16xf32>
    %42 = tpu.matmul %39, %40, %cst_19 {dimension_numbers = #tpu.dot_dimension_numbers<[2], [2], [1], [1], [0, 0, 0, 1, 1, 1], [0], [0]>} : vector<2x16x8xf32>, vector<2x16x8xf32>, vector<2x16x16xf32> -> vector<2x16x16xf32>
    "tpu.trace_stop"() : () -> ()
    %cst_20 = arith.constant dense<0xFF800000> : vector<2x16xf32>
    %43 = vector.multi_reduction <maximumf>, %42, %cst_20 [2] : vector<2x16x16xf32> to vector<2x16xf32>
    %44 = vector.shape_cast %43 : vector<2x16xf32> to vector<2x16x1xf32>
    %45 = vector.broadcast %44 : vector<2x16x1xf32> to vector<2x16x16xf32>
    %46 = arith.subf %42, %45 : vector<2x16x16xf32>
    %47 = math.exp %46 : vector<2x16x16xf32>
    %cst_21 = arith.constant dense<0.000000e+00> : vector<2x16xf32>
    %48 = vector.multi_reduction <add>, %47, %cst_21 [2] : vector<2x16x16xf32> to vector<2x16xf32>
    %49 = vector.shape_cast %48 : vector<2x16xf32> to vector<2x16x1xf32>
    %50 = tpu.reciprocal %49 {approx = true} : vector<2x16x1xf32> -> vector<2x16x1xf32>
    %51 = vector.broadcast %50 : vector<2x16x1xf32> to vector<2x16x16xf32>
    %52 = arith.mulf %47, %51 : vector<2x16x16xf32>
    "tpu.trace_start"() <{level = 10 : i32, message = "bts,bsd->btd"}> : () -> ()
    %cst_22 = arith.constant dense<0.000000e+00> : vector<2x16x8xf32>
    %53 = tpu.matmul %52, %41, %cst_22 {dimension_numbers = #tpu.dot_dimension_numbers<[2], [1], [1], [2], [0, 0, 0, 1, 1, 2], [0], [0]>} : vector<2x16x16xf32>, vector<2x16x8xf32>, vector<2x16x8xf32> -> vector<2x16x8xf32>
    "tpu.trace_stop"() : () -> ()
    %54 = vector.shape_cast %53 : vector<2x16x8xf32> to vector<32x8xf32>
    %55 = vector.extract_strided_slice %38 {offsets = [0, 0, 8], sizes = [2, 16, 8], strides = [1, 1, 1]} : vector<2x16x96xf32> to vector<2x16x8xf32>
    %56 = vector.extract_strided_slice %38 {offsets = [0, 0, 40], sizes = [2, 16, 8], strides = [1, 1, 1]} : vector<2x16x96xf32> to vector<2x16x8xf32>
    %57 = vector.extract_strided_slice %38 {offsets = [0, 0, 72], sizes = [2, 16, 8], strides = [1, 1, 1]} : vector<2x16x96xf32> to vector<2x16x8xf32>
    "tpu.trace_start"() <{level = 10 : i32, message = "btd,bsd->bts"}> : () -> ()
    %cst_23 = arith.constant dense<0.000000e+00> : vector<2x16x16xf32>
    %58 = tpu.matmul %55, %56, %cst_23 {dimension_numbers = #tpu.dot_dimension_numbers<[2], [2], [1], [1], [0, 0, 0, 1, 1, 1], [0], [0]>} : vector<2x16x8xf32>, vector<2x16x8xf32>, vector<2x16x16xf32> -> vector<2x16x16xf32>
    "tpu.trace_stop"() : () -> ()
    %cst_24 = arith.constant dense<0xFF800000> : vector<2x16xf32>
    %59 = vector.multi_reduction <maximumf>, %58, %cst_24 [2] : vector<2x16x16xf32> to vector<2x16xf32>
    %60 = vector.shape_cast %59 : vector<2x16xf32> to vector<2x16x1xf32>
    %61 = vector.broadcast %60 : vector<2x16x1xf32> to vector<2x16x16xf32>
    %62 = arith.subf %58, %61 : vector<2x16x16xf32>
    %63 = math.exp %62 : vector<2x16x16xf32>
    %cst_25 = arith.constant dense<0.000000e+00> : vector<2x16xf32>
    %64 = vector.multi_reduction <add>, %63, %cst_25 [2] : vector<2x16x16xf32> to vector<2x16xf32>
    %65 = vector.shape_cast %64 : vector<2x16xf32> to vector<2x16x1xf32>
    %66 = tpu.reciprocal %65 {approx = true} : vector<2x16x1xf32> -> vector<2x16x1xf32>
    %67 = vector.broadcast %66 : vector<2x16x1xf32> to vector<2x16x16xf32>
    %68 = arith.mulf %63, %67 : vector<2x16x16xf32>
    "tpu.trace_start"() <{level = 10 : i32, message = "bts,bsd->btd"}> : () -> ()
    %cst_26 = arith.constant dense<0.000000e+00> : vector<2x16x8xf32>
    %69 = tpu.matmul %68, %57, %cst_26 {dimension_numbers = #tpu.dot_dimension_numbers<[2], [1], [1], [2], [0, 0, 0, 1, 1, 2], [0], [0]>} : vector<2x16x16xf32>, vector<2x16x8xf32>, vector<2x16x8xf32> -> vector<2x16x8xf32>
    "tpu.trace_stop"() : () -> ()
    %70 = vector.shape_cast %69 : vector<2x16x8xf32> to vector<32x8xf32>
    %71 = vector.extract_strided_slice %38 {offsets = [0, 0, 16], sizes = [2, 16, 8], strides = [1, 1, 1]} : vector<2x16x96xf32> to vector<2x16x8xf32>
    %72 = vector.extract_strided_slice %38 {offsets = [0, 0, 48], sizes = [2, 16, 8], strides = [1, 1, 1]} : vector<2x16x96xf32> to vector<2x16x8xf32>
    %73 = vector.extract_strided_slice %38 {offsets = [0, 0, 80], sizes = [2, 16, 8], strides = [1, 1, 1]} : vector<2x16x96xf32> to vector<2x16x8xf32>
    "tpu.trace_start"() <{level = 10 : i32, message = "btd,bsd->bts"}> : () -> ()
    %cst_27 = arith.constant dense<0.000000e+00> : vector<2x16x16xf32>
    %74 = tpu.matmul %71, %72, %cst_27 {dimension_numbers = #tpu.dot_dimension_numbers<[2], [2], [1], [1], [0, 0, 0, 1, 1, 1], [0], [0]>} : vector<2x16x8xf32>, vector<2x16x8xf32>, vector<2x16x16xf32> -> vector<2x16x16xf32>
    "tpu.trace_stop"() : () -> ()
    %cst_28 = arith.constant dense<0xFF800000> : vector<2x16xf32>
    %75 = vector.multi_reduction <maximumf>, %74, %cst_28 [2] : vector<2x16x16xf32> to vector<2x16xf32>
    %76 = vector.shape_cast %75 : vector<2x16xf32> to vector<2x16x1xf32>
    %77 = vector.broadcast %76 : vector<2x16x1xf32> to vector<2x16x16xf32>
    %78 = arith.subf %74, %77 : vector<2x16x16xf32>
    %79 = math.exp %78 : vector<2x16x16xf32>
    %cst_29 = arith.constant dense<0.000000e+00> : vector<2x16xf32>
    %80 = vector.multi_reduction <add>, %79, %cst_29 [2] : vector<2x16x16xf32> to vector<2x16xf32>
    %81 = vector.shape_cast %80 : vector<2x16xf32> to vector<2x16x1xf32>
    %82 = tpu.reciprocal %81 {approx = true} : vector<2x16x1xf32> -> vector<2x16x1xf32>
    %83 = vector.broadcast %82 : vector<2x16x1xf32> to vector<2x16x16xf32>
    %84 = arith.mulf %79, %83 : vector<2x16x16xf32>
    "tpu.trace_start"() <{level = 10 : i32, message = "bts,bsd->btd"}> : () -> ()
    %cst_30 = arith.constant dense<0.000000e+00> : vector<2x16x8xf32>
    %85 = tpu.matmul %84, %73, %cst_30 {dimension_numbers = #tpu.dot_dimension_numbers<[2], [1], [1], [2], [0, 0, 0, 1, 1, 2], [0], [0]>} : vector<2x16x16xf32>, vector<2x16x8xf32>, vector<2x16x8xf32> -> vector<2x16x8xf32>
    "tpu.trace_stop"() : () -> ()
    %86 = vector.shape_cast %85 : vector<2x16x8xf32> to vector<32x8xf32>
    %87 = vector.extract_strided_slice %38 {offsets = [0, 0, 24], sizes = [2, 16, 8], strides = [1, 1, 1]} : vector<2x16x96xf32> to vector<2x16x8xf32>
    %88 = vector.extract_strided_slice %38 {offsets = [0, 0, 56], sizes = [2, 16, 8], strides = [1, 1, 1]} : vector<2x16x96xf32> to vector<2x16x8xf32>
    %89 = vector.extract_strided_slice %38 {offsets = [0, 0, 88], sizes = [2, 16, 8], strides = [1, 1, 1]} : vector<2x16x96xf32> to vector<2x16x8xf32>
    "tpu.trace_start"() <{level = 10 : i32, message = "btd,bsd->bts"}> : () -> ()
    %cst_31 = arith.constant dense<0.000000e+00> : vector<2x16x16xf32>
    %90 = tpu.matmul %87, %88, %cst_31 {dimension_numbers = #tpu.dot_dimension_numbers<[2], [2], [1], [1], [0, 0, 0, 1, 1, 1], [0], [0]>} : vector<2x16x8xf32>, vector<2x16x8xf32>, vector<2x16x16xf32> -> vector<2x16x16xf32>
    "tpu.trace_stop"() : () -> ()
    %cst_32 = arith.constant dense<0xFF800000> : vector<2x16xf32>
    %91 = vector.multi_reduction <maximumf>, %90, %cst_32 [2] : vector<2x16x16xf32> to vector<2x16xf32>
    %92 = vector.shape_cast %91 : vector<2x16xf32> to vector<2x16x1xf32>
    %93 = vector.broadcast %92 : vector<2x16x1xf32> to vector<2x16x16xf32>
    %94 = arith.subf %90, %93 : vector<2x16x16xf32>
    %95 = math.exp %94 : vector<2x16x16xf32>
    %cst_33 = arith.constant dense<0.000000e+00> : vector<2x16xf32>
    %96 = vector.multi_reduction <add>, %95, %cst_33 [2] : vector<2x16x16xf32> to vector<2x16xf32>
    %97 = vector.shape_cast %96 : vector<2x16xf32> to vector<2x16x1xf32>
    %98 = tpu.reciprocal %97 {approx = true} : vector<2x16x1xf32> -> vector<2x16x1xf32>
    %99 = vector.broadcast %98 : vector<2x16x1xf32> to vector<2x16x16xf32>
    %100 = arith.mulf %95, %99 : vector<2x16x16xf32>
    "tpu.trace_start"() <{level = 10 : i32, message = "bts,bsd->btd"}> : () -> ()
    %cst_34 = arith.constant dense<0.000000e+00> : vector<2x16x8xf32>
    %101 = tpu.matmul %100, %89, %cst_34 {dimension_numbers = #tpu.dot_dimension_numbers<[2], [1], [1], [2], [0, 0, 0, 1, 1, 2], [0], [0]>} : vector<2x16x16xf32>, vector<2x16x8xf32>, vector<2x16x8xf32> -> vector<2x16x8xf32>
    "tpu.trace_stop"() : () -> ()
    %102 = vector.shape_cast %101 : vector<2x16x8xf32> to vector<32x8xf32>
    %103 = tpu.concatenate %54, %70, %86, %102 in 1 : vector<32x8xf32>, vector<32x8xf32>, vector<32x8xf32>, vector<32x8xf32> -> vector<32x32xf32>
    %cst_35 = arith.constant dense<0.000000e+00> : vector<32x32xf32>
    %104 = tpu.matmul %103, %2, %cst_35 {dimension_numbers = #tpu.dot_dimension_numbers<[1], [0], [0], [1], [0, 0, 1, 1], [], []>} : vector<32x32xf32>, vector<32x32xf32>, vector<32x32xf32> -> vector<32x32xf32>
    %105 = vector.broadcast %9 : vector<1x32xf32> to vector<32x32xf32>
    %106 = arith.addf %104, %105 : vector<32x32xf32>
    %107 = arith.addf %0, %106 : vector<32x32xf32>
    %cst_36 = arith.constant dense<0.000000e+00> : vector<32xf32>
    %108 = vector.multi_reduction <add>, %107, %cst_36 [1] : vector<32x32xf32> to vector<32xf32>
    %109 = vector.shape_cast %108 : vector<32xf32> to vector<32x1xf32>
    %cst_37 = arith.constant 3.200000e+01 : f32
    %110 = vector.broadcast %cst_37 : f32 to vector<32x1xf32>
    %111 = arith.divf %109, %110 : vector<32x1xf32>
    %112 = vector.broadcast %111 : vector<32x1xf32> to vector<32x32xf32>
    %113 = arith.subf %107, %112 : vector<32x32xf32>
    %114 = arith.mulf %113, %113 : vector<32x32xf32>
    %cst_38 = arith.constant dense<0.000000e+00> : vector<32xf32>
    %115 = vector.multi_reduction <add>, %114, %cst_38 [1] : vector<32x32xf32> to vector<32xf32>
    %116 = vector.shape_cast %115 : vector<32xf32> to vector<32x1xf32>
    %cst_39 = arith.constant 3.200000e+01 : f32
    %117 = vector.broadcast %cst_39 : f32 to vector<32x1xf32>
    %118 = arith.divf %116, %117 : vector<32x1xf32>
    %119 = vector.broadcast %111 : vector<32x1xf32> to vector<32x32xf32>
    %120 = arith.subf %107, %119 : vector<32x32xf32>
    %cst_40 = arith.constant 9.99999974E-6 : f32
    %121 = vector.broadcast %cst_40 : f32 to vector<32x1xf32>
    %122 = arith.addf %118, %121 : vector<32x1xf32>
    %123 = math.rsqrt %122 : vector<32x1xf32>
    %124 = vector.broadcast %123 : vector<32x1xf32> to vector<32x32xf32>
    %125 = arith.mulf %120, %124 : vector<32x32xf32>
    %126 = vector.broadcast %7 : vector<1x32xf32> to vector<32x32xf32>
    %127 = arith.mulf %125, %126 : vector<32x32xf32>
    %128 = vector.broadcast %8 : vector<1x32xf32> to vector<32x32xf32>
    %129 = arith.addf %127, %128 : vector<32x32xf32>
    %cst_41 = arith.constant dense<0.000000e+00> : vector<32x64xf32>
    %130 = tpu.matmul %129, %3, %cst_41 {dimension_numbers = #tpu.dot_dimension_numbers<[1], [0], [0], [1], [0, 0, 1, 1], [], []>} : vector<32x32xf32>, vector<32x64xf32>, vector<32x64xf32> -> vector<32x64xf32>
    %131 = vector.broadcast %11 : vector<1x64xf32> to vector<32x64xf32>
    %132 = arith.addf %130, %131 : vector<32x64xf32>
    %cst_42 = arith.constant 5.000000e-01 : f32
    %133 = vector.broadcast %cst_42 : f32 to vector<32x64xf32>
    %134 = arith.mulf %133, %132 : vector<32x64xf32>
    %cst_43 = arith.constant 0.707106769 : f32
    %135 = vector.broadcast %cst_43 : f32 to vector<32x64xf32>
    %136 = arith.mulf %132, %135 : vector<32x64xf32>
    %137 = math.erf %136 : vector<32x64xf32>
    %cst_44 = arith.constant 1.000000e+00 : f32
    %138 = vector.broadcast %cst_44 : f32 to vector<32x64xf32>
    %139 = arith.addf %138, %137 : vector<32x64xf32>
    %140 = arith.mulf %134, %139 : vector<32x64xf32>
    %cst_45 = arith.constant dense<0.000000e+00> : vector<32x32xf32>
    %141 = tpu.matmul %140, %4, %cst_45 {dimension_numbers = #tpu.dot_dimension_numbers<[1], [0], [0], [1], [0, 0, 1, 1], [], []>} : vector<32x64xf32>, vector<64x32xf32>, vector<32x32xf32> -> vector<32x32xf32>
    %142 = vector.broadcast %10 : vector<1x32xf32> to vector<32x32xf32>
    %143 = arith.addf %141, %142 : vector<32x32xf32>
    %144 = arith.addf %107, %143 : vector<32x32xf32>
    %c0_46 = arith.constant 0 : index
    %c0_47 = arith.constant 0 : index
    %145 = vector.load %arg2[%c0_46, %c0_47] : memref<32x32xf32, #tpu.memory_space<vmem>>, vector<32x32xf32>
    tpu.vector_store %arg2[%c0_46, %c0_47], %144 {strides = array<i32>} : memref<32x32xf32, #tpu.memory_space<vmem>>, vector<32x32xf32>,
    return
  }
}

</mosaic_0001>

<bundles_post_ra>
// kernel: qc_whisper_encoder_layer.1
= control target key start
LH: loop header
LB: loop body
LE: loop exit
PB: predicated region body
PF: predicated region fallthrough
CT: control target
= control target key end

     0   :  { %vm39_vm0 = vcmask 261120   ;;  %v1683_v8 = vmov 32.0   ;;  %s1684_s3 = smov 96   ;;  %s1685_s4 = smov 120   ;;  %vm193_vm14 = vcmask 64512   ;;  %vm262_vm15 = vcmask 130048   ;;  %s2221_s0 = inlined_call_operand.vmem [shape: f32[32,32], index: 0, kind: input, shape index: {}, may-alias: {0,2}]   ;;  %s2222_s1 = inlined_call_operand.vmem [shape: f32[136,128], index: 1, kind: input, shape index: {}]   ;;  %s2223_s2 = inlined_call_operand.vmem [shape: f32[32,32], index: 2, kind: output, shape index: {}, may-alias: {0,2}]  }
   0x1   :  { %v13_v0 = vld [vmem:[%s2221_s0 + $0x10] sm:$0xff]  ;;  %v11_v1 = vld [vmem:[%s2221_s0] sm:$0xff]  ;;  %v14_v4 = vld [vmem:[%s2221_s0 + $0x18] sm:$0xff]  ;;  %1589 = vrcp.f32 %v1683_v8  ;;  %s1686_s5 = smov 80   ;;  %s1687_s6 = smov 88  }
   0x2   :  { %v46_v2 = vsel %vm39_vm0, %v13_v0, 0.0  ;;  %v40_v3 = vsel %vm39_vm0, %v11_v1, 0.0  ;;  %v12_v5 = vld [vmem:[%s2221_s0 + $0x8] sm:$0xff]  ;;  %v49_v6 = vsel %vm39_vm0, %v14_v4, 0.0  ;;  %v1759_v35 = vld [vmem:[%s2222_s1 + $0x18] sm:$0xff]  ;;  %v1765_v36 = vld [vmem:[%s2222_s1 + $0x10] sm:$0xff] }
   0x3   :  { %47 = vadd.xlane.f32.xlu1 %v46_v2  ;;  %41 = vadd.xlane.f32.xlu0 %v40_v3  ;;  %v43_v7 = vsel %vm39_vm0, %v12_v5, 0.0  ;;  %v1771_v37 = vld [vmem:[%s2222_s1 + $0x8] sm:$0xff]  ;;  %v1777_v38 = vld [vmem:[%s2222_s1] sm:$0xff]  ;;  %v1571_v39 = vpack.i.bf16 %v1765_v36, %v1759_v35  ;;  %s1688_s7 = smov 112   ;;  %s1689_s8 = smov 104  }
   0x4   :  { %170 = vmatpush.msra.mxu0 %v1759_v35  ;;  %v1576_v40 = vpack.i.bf16 %v1777_v38, %v1771_v37  ;;  %v1581_v3 = vld [vmem:[%s2222_s1 + $0x80] ss:$0 sm:$0xff]  ;;  %s1690_s9 = smov 72   ;;  %s1691_s10 = smov 64  }
   0x5   :  { %s1692_s11 = smov 56   ;;  %s1693_s12 = smov 48  }
   0x6   :  { %171 = vmatpush.msra.mxu0 %v1765_v36  ;;  %s1694_s13 = smov 40   ;;  %s1695_s14 = smov 32  }
   0x7   :  { %v1590_v9 = vpop.eup %1589  ;;  %s1696_s15 = smov 8   ;;  %s1697_s16 = smov 16  }
   0x8   :  { %v53_v10 = vmul.f32 32.0, %v1590_v9  ;;  %vm57_vm1 = vweird.f32 %v1590_v9  ;;  %172 = vmatpush.msra.mxu0 %v1771_v37  ;;  %s1698_s17 = smov 24  }
   0xa   :  { %v54_v11 = vsub.f32 1.0, %v53_v10  ;;  %173 = vmatpush.msra.mxu0 %v1777_v38 }
   0xb   :  { %50 = vadd.xlane.f32.xlu1 %v49_v6  ;;  %44 = vadd.xlane.f32.xlu0 %v43_v7  ;;  %v1582_v7 = vld [vmem:[%s2222_s1 + $0x81] ss:$0 sm:$0xff] }
   0xc   :  { %v55_v12 = vmul.f32 %v1590_v9, %v54_v11 }
   0xe   :  { %v56_v13 = vadd.f32 %v1590_v9, %v55_v12 }
  0x10   :  { %v1730_v14 = vsel %vm57_vm1, %v1590_v9, %v56_v13  ;;  %vm1009_vm1 = vcmask 195584  }
  0x76   :  { %v48_v15 = vpop.xlane.xlu1 %47  ;;  %v42_v16 = vpop.xlane.xlu0 %41 }
  0x77   :  { %v61_v17 = vmul.f32 %v1730_v14, %v48_v15  ;;  %v59_v18 = vmul.f32 %v1730_v14, %v42_v16 }
  0x79   :  { %v1734_v19 = vsub.f32 %v13_v0, %v61_v17  ;;  %v1736_v20 = vsub.f32 %v11_v1, %v59_v18 }
  0x7b   :  { %v69_v21 = vmul.f32 %v1734_v19, %v1734_v19  ;;  %v67_v22 = vmul.f32 %v1736_v20, %v1736_v20 }
  0x7d   :  { %v77_v23 = vsel %vm39_vm0, %v69_v21, 0.0  ;;  %v71_v24 = vsel %vm39_vm0, %v67_v22, 0.0 }
  0x7e   :  { %v51_v25 = vpop.xlane.xlu1 %50  ;;  %78 = vadd.xlane.f32.xlu0 %v77_v23  ;;  %72 = vadd.xlane.f32.xlu2 %v71_v24  ;;  %v45_v26 = vpop.xlane.xlu0 %44 }
  0x7f   :  { %v62_v27 = vmul.f32 %v1730_v14, %v51_v25  ;;  %v60_v28 = vmul.f32 %v1730_v14, %v45_v26 }
  0x81   :  { %v1746_v29 = vsub.f32 %v14_v4, %v62_v27  ;;  %v1748_v30 = vsub.f32 %v12_v5, %v60_v28 }
  0x83   :  { %v70_v31 = vmul.f32 %v1746_v29, %v1746_v29  ;;  %v68_v32 = vmul.f32 %v1748_v30, %v1748_v30 }
  0x85   :  { %v80_v33 = vsel %vm39_vm0, %v70_v31, 0.0  ;;  %v74_v34 = vsel %vm39_vm0, %v68_v32, 0.0 }
  0x86   :  { %81 = vadd.xlane.f32.xlu1 %v80_v33  ;;  %75 = vadd.xlane.f32.xlu2 %v74_v34 }
  0xf1   :  { %v73_v41 = vpop.xlane.xlu2 %72  ;;  %v79_v42 = vpop.xlane.xlu0 %78 }
  0xf2   :  { %v83_v43 = vmul.f32 %v73_v41, %v1730_v14  ;;  %v85_v44 = vmul.f32 %v79_v42, %v1730_v14 }
  0xf4   :  { %v87_v45 = vadd.f32 1e-05, %v83_v43  ;;  %v89_v46 = vadd.f32 1e-05, %v85_v44 }
  0xf6   :  { %1591 = vrsqrt.f32 %v87_v45  ;;  %vm97_vm3 = vweird.f32 %v87_v45  ;;  %vm117_vm5 = vweird.f32 %v89_v46 }
  0xf7   :  { %1593 = vrsqrt.f32 %v89_v46 }
  0xf9   :  { %v82_v47 = vpop.xlane.xlu1 %81  ;;  %v76_v48 = vpop.xlane.xlu2 %75 }
  0xfa   :  { %v86_v49 = vmul.f32 %v82_v47, %v1730_v14  ;;  %v84_v50 = vmul.f32 %v76_v48, %v1730_v14 }
  0xfc   :  { %v1592_v51 = vpop.eup %1591  ;;  %v90_v52 = vadd.f32 1e-05, %v86_v49  ;;  %v88_v53 = vadd.f32 1e-05, %v84_v50 }
  0xfd   :  { %v1594_v54 = vpop.eup %1593  ;;  %v92_v55 = vmul.f32 %v1592_v51, %v87_v45  ;;  %vm98_vm2 = vweird.f32 %v1592_v51 }
  0xfe   :  { %v112_v56 = vmul.f32 %v1594_v54, %v89_v46  ;;  %1595 = vrsqrt.f32 %v90_v52  ;;  %vm99_vm4 = vmor %vm97_vm3, %vm98_vm2  ;;  %vm118_vm6 = vweird.f32 %v1594_v54  ;;  %vm107_vm9 = vweird.f32 %v88_v53 }
  0xff   :  { %v93_v57 = vmul.f32 %v1592_v51, %v92_v55  ;;  %1597 = vrsqrt.f32 %v88_v53  ;;  %vm119_vm8 = vmor %vm117_vm5, %vm118_vm6  ;;  %vm127_vm11 = vweird.f32 %v90_v52 }
 0x100   :  { %v113_v59 = vmul.f32 %v1594_v54, %v112_v56 }
 0x101   :  { %v94_v58 = vmul.f32 0.5, %v93_v57 }
 0x102   :  { %v114_v0 = vmul.f32 0.5, %v113_v59 }
 0x103   :  { %v95_v60 = vsub.f32 1.5, %v94_v58 }
 0x104   :  { %v1596_v61 = vpop.eup %1595  ;;  %v115_v8 = vsub.f32 1.5, %v114_v0 }
 0x105   :  { %v1598_v62 = vpop.eup %1597  ;;  %v96_v63 = vmul.f32 %v1592_v51, %v95_v60  ;;  %v122_v1 = vmul.f32 %v1596_v61, %v90_v52  ;;  %vm128_vm12 = vweird.f32 %v1596_v61 }
 0x106   :  { %v102_v2 = vmul.f32 %v1598_v62, %v88_v53  ;;  %vm108_vm7 = vweird.f32 %v1598_v62  ;;  %v116_v15 = vmul.f32 %v1594_v54, %v115_v8  ;;  %vm129_vm13 = vmor %vm127_vm11, %vm128_vm12 }
 0x107   :  { %v100_v4 = vsel %vm99_vm4, %v1592_v51, %v96_v63  ;;  %v123_v9 = vmul.f32 %v1596_v61, %v122_v1  ;;  %vm109_vm10 = vmor %vm107_vm9, %vm108_vm7 }
 0x108   :  { %v103_v5 = vmul.f32 %v1598_v62, %v102_v2  ;;  %v131_v6 = vmul.f32 %v100_v4, %v1736_v20  ;;  %v120_v21 = vsel %vm119_vm8, %v1594_v54, %v116_v15 }
 0x109   :  { %v124_v16 = vmul.f32 0.5, %v123_v9  ;;  %v133_v25 = vmul.f32 %v120_v21, %v1734_v19  ;;  %v1583_v19 = vld [vmem:[%s2222_s1 + $0x87] ss:$0 sm:$0xff] }
 0x10a   :  { %v104_v10 = vmul.f32 0.5, %v103_v5  ;;  %v136_v11 = vmul.f32 %v1581_v3, %v131_v6 }
 0x10b   :  { %v125_v22 = vsub.f32 1.5, %v124_v16  ;;  %v138_v27 = vmul.f32 %v1581_v3, %v133_v25 }
 0x10c   :  { %v105_v12 = vsub.f32 1.5, %v104_v10  ;;  %v141_v13 = vadd.f32 %v1582_v7, %v136_v11 }
 0x10d   :  { %v126_v26 = vmul.f32 %v1596_v61, %v125_v22  ;;  %v143_v31 = vadd.f32 %v1582_v7, %v138_v27 }
 0x10e   :  { %v106_v17 = vmul.f32 %v1598_v62, %v105_v12  ;;  %1447 = vmatmul.msk.f32.vlgmr.msra.gmra.mxu0 %vm39_vm0, %v141_v13 }
 0x10f   :  { %v130_v28 = vsel %vm129_vm13, %v1596_v61, %v126_v26 }
 0x110   :  { %v110_v18 = vsel %vm109_vm10, %v1598_v62, %v106_v17  ;;  %v134_v32 = vmul.f32 %v130_v28, %v1746_v29 }
 0x111   :  { %v132_v20 = vmul.f32 %v110_v18, %v1748_v30 }
 0x112   :  { %v139_v30 = vmul.f32 %v1581_v3, %v134_v32 }
 0x113   :  { %v137_v23 = vmul.f32 %v1581_v3, %v132_v20 }
 0x114   :  { %v144_v33 = vadd.f32 %v1582_v7, %v139_v30 }
 0x115   :  { %v142_v24 = vadd.f32 %v1582_v7, %v137_v23 }
 0x117   :  { %1448 = vmatmul.msk.f32.gmra.mxu0 %vm39_vm0, %v142_v24 }
 0x11f   :  { %1449 = vmatmul.msk.f32.gmra.mxu0 %vm39_vm0, %v143_v31 }
 0x127   :  { %1450 = vmatmul.msk.f32.gmra.mxu0 %vm39_vm0, %v144_v33 }
 0x18b   :  { %v175_v34 = vpop.f32.mrf.mxu0 }
 0x18c   :  { %v176_v44 = vadd.f32 %v1583_v19, %v175_v34 }
 0x194   :  { %v178_v41 = vpop.f32.mrf.mxu0 }
 0x195   :  { %v179_v42 = vadd.f32 %v1583_v19, %v178_v41 }
 0x197   :  { %191 = vrot.lane.b32.xlu1 %v179_v42, %s1684_s3  ;;  %v1808_v48 = vpack.i.bf16 %v176_v44, %v179_v42 }
 0x19c   :  { %v181_v43 = vpop.f32.mrf.mxu0 }
 0x19d   :  { %v182_v45 = vadd.f32 %v1583_v19, %v181_v43 }
 0x19f   :  { %377 = vrot.lane.b32.xlu1 %v176_v44, %s1685_s4  ;;  %227 = vrot.lane.b32.xlu0 %v182_v45, %s1684_s3 }
 0x1a4   :  { %v184_v29 = vpop.f32.mrf.mxu0 }
 0x1a5   :  { %v185_v46 = vadd.f32 %v1583_v19, %v184_v29 }
 0x1a7   :  { %575 = vrot.lane.b32.xlu1 %v179_v42, %s1686_s5  ;;  %229 = vrot.lane.b32.xlu2 %v185_v46, %s1684_s3  ;;  %v1805_v47 = vpack.i.bf16 %v182_v45, %v185_v46 }
 0x1a8   :  { %383 = vrot.lane.b32.xlu0 %v179_v42, %s1687_s6 }
 0x1af   :  { %189 = vrot.lane.b32.xlu2 %v176_v44, %s1684_s3  ;;  %416 = vrot.lane.b32.xlu1 %v182_v45, %s1685_s4 }
 0x1b0   :  { %379 = vrot.lane.b32.xlu0 %v179_v42, %s1685_s4 }
 0x1b7   :  { %381 = vrot.lane.b32.xlu2 %v176_v44, %s1687_s6  ;;  %571 = vrot.lane.b32.xlu1 %v179_v42, %s1688_s7 }
 0x1b8   :  { %420 = vrot.lane.b32.xlu0 %v182_v45, %s1687_s6 }
 0x1bf   :  { %573 = vrot.lane.b32.xlu2 %v176_v44, %s1686_s5  ;;  %612 = vrot.lane.b32.xlu1 %v182_v45, %s1686_s5 }
 0x1c0   :  { %569 = vrot.lane.b32.xlu0 %v176_v44, %s1688_s7 }
 0x1c7   :  { %422 = vrot.lane.b32.xlu2 %v185_v46, %s1687_s6  ;;  %761 = vrot.lane.b32.xlu1 %v176_v44, %s1689_s8 }
 0x1c8   :  { %765 = vrot.lane.b32.xlu0 %v176_v44, %s1690_s9 }
 0x1cf   :  { %767 = vrot.lane.b32.xlu2 %v179_v42, %s1690_s9  ;;  %806 = vrot.lane.b32.xlu1 %v185_v46, %s1690_s9 }
 0x1d0   :  { %614 = vrot.lane.b32.xlu0 %v185_v46, %s1686_s5 }
 0x1d7   :  { %418 = vrot.lane.b32.xlu2 %v185_v46, %s1685_s4  ;;  %802 = vrot.lane.b32.xlu1 %v185_v46, %s1689_s8 }
 0x1d8   :  { %610 = vrot.lane.b32.xlu0 %v185_v46, %s1688_s7 }
 0x1df   :  { %608 = vrot.lane.b32.xlu2 %v182_v45, %s1688_s7  ;;  %1542 = vrot.lane.b32.xlu1 %v1805_v47, %s1691_s10 }
 0x1e0   :  { %804 = vrot.lane.b32.xlu0 %v182_v45, %s1690_s9 }
 0x1e7   :  { %763 = vrot.lane.b32.xlu2 %v179_v42, %s1689_s8 }
 0x1e8   :  { %1537 = vrot.lane.b32.xlu0 %v1808_v48, %s1691_s10 }
 0x1ef   :  { %800 = vrot.lane.b32.xlu2 %v182_v45, %s1689_s8 }
 0x1f7   :  { %1532 = vrot.lane.b32.xlu2 %v1808_v48, %s1692_s11 }
 0x201   :  { %v230_v49 = vpop.permute.xlu2 %229 }
 0x202   :  { %1455 = vmatpush.xpose.msk.msra.mxu2 %vm193_vm14, %v230_v49 }
 0x209   :  { %v192_v50 = vpop.permute.xlu1 %191  ;;  %v190_v51 = vpop.permute.xlu2 %189 }
 0x20a   :  { %1451 = vmatpush.xpose.msk.msra.mxu1 %vm193_vm14, %v192_v50 }
 0x20e   :  { %1452 = vmatpush.xpose.msk.msra.mxu1 %vm193_vm14, %v190_v51 }
 0x211   :  { %v378_v52 = vpop.permute.xlu1 %377  ;;  %1453 = vmatmul.msk.f32.vlgmr.msra.gmra.mxu1 %vm193_vm14, %v176_v44  ;;  %v382_v53 = vpop.permute.xlu2 %381 }
 0x212   :  { %v228_v54 = vpop.permute.xlu0 %227 }
 0x213   :  { %1456 = vmatpush.xpose.msk.msra.mxu2 %vm193_vm14, %v228_v54 }
 0x216   :  { %1457 = vmatmul.msk.f32.vlgmr.msra.gmra.mxu2 %vm193_vm14, %v182_v45 }
 0x219   :  { %v576_v55 = vpop.permute.xlu1 %575  ;;  %1454 = vmatmul.msk.f32.gmra.mxu1 %vm193_vm14, %v179_v42  ;;  %v574_v56 = vpop.permute.xlu2 %573 }
 0x21a   :  { %v384_v57 = vpop.permute.xlu0 %383 }
 0x21b   :  { %1463 = vmatpush.xpose.msk.msrb.mxu1 %vm193_vm14, %v384_v57 }
 0x21e   :  { %1458 = vmatmul.msk.f32.gmra.mxu2 %vm193_vm14, %v185_v46 }
 0x21f   :  { %1464 = vmatpush.xpose.msk.msrb.mxu1 %vm193_vm14, %v382_v53 }
 0x221   :  { %v423_v58 = vpop.permute.xlu2 %422  ;;  %v417_v59 = vpop.permute.xlu1 %416 }
 0x222   :  { %1465 = vmatmul.msk.f32.vlgmr.msrb.gmra.mxu1 %vm193_vm14, %v378_v52  ;;  %v380_v60 = vpop.permute.xlu0 %379  ;;  %1467 = vmatpush.xpose.msk.msrb.mxu2 %vm193_vm14, %v423_v58 }
 0x223   :  { %1475 = vmatpush.xpose.msk.msra.mxu1 %vm193_vm14, %v576_v55 }
 0x227   :  { %1476 = vmatpush.xpose.msk.msra.mxu1 %vm193_vm14, %v574_v56 }
 0x229   :  { %v768_v61 = vpop.permute.xlu2 %767  ;;  %v572_v62 = vpop.permute.xlu1 %571 }
 0x22a   :  { %1466 = vmatmul.msk.f32.gmra.mxu1 %vm193_vm14, %v380_v60  ;;  %v421_v63 = vpop.permute.xlu0 %420 }
 0x22b   :  { %1468 = vmatpush.xpose.msk.msrb.mxu2 %vm193_vm14, %v421_v63  ;;  %1487 = vmatpush.xpose.msk.msrb.mxu1 %vm193_vm14, %v768_v61 }
 0x22e   :  { %1469 = vmatmul.msk.f32.vlgmr.msrb.gmra.mxu2 %vm193_vm14, %v417_v59 }
 0x231   :  { %v419_v0 = vpop.permute.xlu2 %418  ;;  %v613_v1 = vpop.permute.xlu1 %612 }
 0x232   :  { %v570_v2 = vpop.permute.xlu0 %569 }
 0x233   :  { %1477 = vmatmul.msk.f32.vlgmr.msra.gmra.mxu1 %vm193_vm14, %v570_v2 }
 0x236   :  { %1470 = vmatmul.msk.f32.gmra.mxu2 %vm193_vm14, %v419_v0 }
 0x239   :  { %v609_v3 = vpop.permute.xlu2 %608  ;;  %v762_v4 = vpop.permute.xlu1 %761 }
 0x23a   :  { %v766_v5 = vpop.permute.xlu0 %765 }
 0x23b   :  { %1478 = vmatmul.msk.f32.gmra.mxu1 %vm193_vm14, %v572_v62 }
 0x23c   :  { %1488 = vmatpush.xpose.msk.msrb.mxu1 %vm193_vm14, %v766_v5 }
 0x241   :  { %v764_v6 = vpop.permute.xlu2 %763  ;;  %v807_v7 = vpop.permute.xlu1 %806 }
 0x242   :  { %v615_v8 = vpop.permute.xlu0 %614 }
 0x243   :  { %1479 = vmatpush.xpose.msk.msra.mxu2 %vm193_vm14, %v615_v8  ;;  %1489 = vmatmul.msk.f32.vlgmr.msrb.gmra.mxu1 %vm193_vm14, %v762_v4 }
 0x247   :  { %1480 = vmatpush.xpose.msk.msra.mxu2 %vm193_vm14, %v613_v1 }
 0x249   :  { %v801_v9 = vpop.permute.xlu2 %800  ;;  %v803_v10 = vpop.permute.xlu1 %802 }
 0x24a   :  { %1481 = vmatmul.msk.f32.vlgmr.msra.gmra.mxu2 %vm193_vm14, %v609_v3  ;;  %v611_v11 = vpop.permute.xlu0 %610 }
 0x24b   :  { %1491 = vmatpush.xpose.msk.msrb.mxu2 %vm193_vm14, %v807_v7  ;;  %1490 = vmatmul.msk.f32.gmra.mxu1 %vm193_vm14, %v764_v6 }
 0x251   :  { %v1543_v12 = vpop.permute.xlu1 %1542  ;;  %v1533_v13 = vpop.permute.xlu2 %1532 }
 0x252   :  { %1482 = vmatmul.msk.f32.gmra.mxu2 %vm193_vm14, %v611_v11  ;;  %v805_v15 = vpop.permute.xlu0 %804  ;;  %v1544_v16 = vunpack.i.l.bf16 %v1543_v12  ;;  %v1545_v17 = vunpack.i.h.bf16 %v1543_v12  ;;  %v1534_v18 = vunpack.i.l.bf16 %v1533_v13  ;;  %v1535_v20 = vunpack.i.h.bf16 %v1533_v13 }
 0x253   :  { %1492 = vmatpush.xpose.msk.msrb.mxu2 %vm193_vm14, %v805_v15 }
 0x254   :  { %368 = vmatpush.msra.mxu3 %v1544_v16 }
 0x256   :  { %369 = vmatpush.msra.mxu3 %v1545_v17 }
 0x258   :  { %525 = vmatpush.msrb.mxu3 %v1534_v18 }
 0x25a   :  { %526 = vmatpush.msrb.mxu3 %v1535_v20  ;;  %1493 = vmatmul.msk.f32.vlgmr.msrb.gmra.mxu2 %vm193_vm14, %v801_v9  ;;  %v1538_v21 = vpop.permute.xlu0 %1537 }
 0x25b   :  { %v1539_v22 = vunpack.i.l.bf16 %v1538_v21  ;;  %v1540_v23 = vunpack.i.h.bf16 %v1538_v21 }
 0x25d   :  { %333 = vmatpush.msrb.mxu0 %v1539_v22 }
 0x25f   :  { %334 = vmatpush.msrb.mxu0 %v1540_v23 }
 0x262   :  { %1494 = vmatmul.msk.f32.gmra.mxu2 %vm193_vm14, %v803_v10 }
 0x28e   :  { %v219_v24 = vpop.f32.mrf.mxu1 }
 0x28f   :  { %v263_v25 = vsel %vm262_vm15, %v219_v24, -inf }
 0x290   :  { %264 = vmax.xlane.f32.xlu0 %v263_v25 }
 0x296   :  { %v222_v26 = vpop.f32.mrf.mxu1 }
 0x297   :  { %v266_v27 = vsel %vm262_vm15, %v222_v26, -inf }
 0x298   :  { %267 = vmax.xlane.f32.xlu1 %v266_v27 }
 0x299   :  { %v256_v28 = vpop.f32.mrf.mxu2 }
 0x29a   :  { %v269_v31 = vsel %vm262_vm15, %v256_v28, -inf }
 0x29b   :  { %270 = vmax.xlane.f32.xlu0 %v269_v31 }
 0x29f   :  { %v410_v32 = vpop.f32.mrf.mxu1 }
 0x2a0   :  { %v455_v30 = vsel %vm262_vm15, %v410_v32, -inf }
 0x2a1   :  { %456 = vmax.xlane.f32.xlu1 %v455_v30  ;;  %v1853_v19 = vpop.f32.mrf.mxu2 }
 0x2a2   :  { %v272_v42 = vsel %vm262_vm15, %v1853_v19, -inf }
 0x2a7   :  { %v1849_v33 = vpop.f32.mrf.mxu1 }
 0x2a8   :  { %v458_v34 = vsel %vm262_vm15, %v1849_v33, -inf }
 0x2a9   :  { %459 = vmax.xlane.f32.xlu2 %v458_v34 }
 0x2b0   :  { %v1855_v41 = vpop.f32.mrf.mxu1 }
 0x2b1   :  { %273 = vmax.xlane.f32.xlu2 %v272_v42  ;;  %v1859_v43 = vpop.f32.mrf.mxu2  ;;  %v647_v44 = vsel %vm262_vm15, %v1855_v41, -inf }
 0x2b2   :  { %648 = vmax.xlane.f32.xlu0 %v647_v44  ;;  %v461_v29 = vsel %vm262_vm15, %v1859_v43, -inf }
 0x2b8   :  { %v1863_v45 = vpop.f32.mrf.mxu1 }
 0x2b9   :  { %462 = vmax.xlane.f32.xlu2 %v461_v29  ;;  %v1867_v46 = vpop.f32.mrf.mxu2  ;;  %v650_v49 = vsel %vm262_vm15, %v1863_v45, -inf }
 0x2ba   :  { %651 = vmax.xlane.f32.xlu1 %v650_v49  ;;  %v464_v50 = vsel %vm262_vm15, %v1867_v46, -inf }
 0x2bb   :  { %465 = vmax.xlane.f32.xlu0 %v464_v50 }
 0x2c0   :  { %v1873_v51 = vpop.f32.mrf.mxu1 }
 0x2c1   :  { %v839_v52 = vsel %vm262_vm15, %v1873_v51, -inf }
 0x2c2   :  { %840 = vmax.xlane.f32.xlu2 %v839_v52 }
 0x2c8   :  { %v1877_v53 = vpop.f32.mrf.mxu1 }
 0x2c9   :  { %v842_v54 = vsel %vm262_vm15, %v1877_v53, -inf }
 0x2ca   :  { %843 = vmax.xlane.f32.xlu2 %v842_v54 }
 0x2cd   :  { %v1881_v55 = vpop.f32.mrf.mxu2 }
 0x2ce   :  { %v653_v56 = vsel %vm262_vm15, %v1881_v55, -inf }
 0x2cf   :  { %654 = vmax.xlane.f32.xlu0 %v653_v56 }
 0x2d5   :  { %v1885_v57 = vpop.f32.mrf.mxu2 }
 0x2d6   :  { %v656_v58 = vsel %vm262_vm15, %v1885_v57, -inf }
 0x2d7   :  { %657 = vmax.xlane.f32.xlu2 %v656_v58 }
 0x2dd   :  { %v1889_v59 = vpop.f32.mrf.mxu2 }
 0x2de   :  { %v845_v60 = vsel %vm262_vm15, %v1889_v59, -inf }
 0x2df   :  { %846 = vmax.xlane.f32.xlu2 %v845_v60 }
 0x2e5   :  { %v1893_v61 = vpop.f32.mrf.mxu2 }
 0x2e6   :  { %v848_v62 = vsel %vm262_vm15, %v1893_v61, -inf }
 0x2e7   :  { %849 = vmax.xlane.f32.xlu0 %v848_v62 }
 0x303   :  { %v265_v63 = vpop.xlane.xlu0 %264 }
 0x304   :  { %v275_v0 = vsub.f32 %v219_v24, %v265_v63 }
 0x306   :  { %v279_v1 = vmul.f32 1.442695, %v275_v0 }
 0x308   :  { %1599 = vpow2.f32 %v279_v1 }
 0x30b   :  { %v268_v2 = vpop.xlane.xlu1 %267 }
 0x30c   :  { %v276_v3 = vsub.f32 %v222_v26, %v268_v2 }
 0x30e   :  { %v1897_v4 = vpop.eup %1599  ;;  %v281_v5 = vmul.f32 1.442695, %v276_v3  ;;  %v271_v6 = vpop.xlane.xlu0 %270 }
 0x30f   :  { %v277_v7 = vsub.f32 %v256_v28, %v271_v6  ;;  %v287_v8 = vsel %vm262_vm15, %v1897_v4, 0.0 }
 0x310   :  { %1601 = vpow2.f32 %v281_v5  ;;  %288 = vadd.xlane.f32.xlu0 %v287_v8 }
 0x311   :  { %v283_v9 = vmul.f32 1.442695, %v277_v7 }
 0x313   :  { %1603 = vpow2.f32 %v283_v9 }
 0x314   :  { %v457_v10 = vpop.xlane.xlu1 %456 }
 0x315   :  { %v467_v11 = vsub.f32 %v410_v32, %v457_v10 }
 0x316   :  { %v1901_v12 = vpop.eup %1601 }
 0x317   :  { %v471_v13 = vmul.f32 1.442695, %v467_v11  ;;  %v290_v15 = vsel %vm262_vm15, %v1901_v12, 0.0 }
 0x318   :  { %291 = vadd.xlane.f32.xlu2 %v290_v15 }
 0x319   :  { %v1905_v16 = vpop.eup %1603  ;;  %1605 = vpow2.f32 %v471_v13 }
 0x31a   :  { %v293_v17 = vsel %vm262_vm15, %v1905_v16, 0.0 }
 0x31b   :  { %294 = vadd.xlane.f32.xlu1 %v293_v17 }
 0x31c   :  { %v460_v18 = vpop.xlane.xlu2 %459 }
 0x31d   :  { %v468_v49 = vsub.f32 %v1849_v33, %v460_v18 }
 0x31f   :  { %v1909_v20 = vpop.eup %1605  ;;  %v473_v52 = vmul.f32 1.442695, %v468_v49 }
 0x320   :  { %v479_v21 = vsel %vm262_vm15, %v1909_v20, 0.0 }
 0x321   :  { %480 = vadd.xlane.f32.xlu0 %v479_v21 }
 0x324   :  { %v274_v22 = vpop.xlane.xlu2 %273 }
 0x325   :  { %v278_v23 = vsub.f32 %v1853_v19, %v274_v22  ;;  %v649_v24 = vpop.xlane.xlu0 %648 }
 0x326   :  { %v659_v26 = vsub.f32 %v1855_v41, %v649_v24 }
 0x327   :  { %v285_v25 = vmul.f32 1.442695, %v278_v23 }
 0x328   :  { %v663_v27 = vmul.f32 1.442695, %v659_v26 }
 0x329   :  { %1607 = vpow2.f32 %v285_v25 }
 0x32a   :  { %1609 = vpow2.f32 %v663_v27 }
 0x32d   :  { %v652_v28 = vpop.xlane.xlu1 %651 }
 0x32e   :  { %v660_v31 = vsub.f32 %v1863_v45, %v652_v28  ;;  %v463_v45 = vpop.xlane.xlu2 %462 }
 0x32f   :  { %v1916_v32 = vpop.eup %1607  ;;  %v469_v54 = vsub.f32 %v1859_v43, %v463_v45 }
 0x330   :  { %v665_v30 = vmul.f32 1.442695, %v660_v31  ;;  %v296_v34 = vsel %vm262_vm15, %v1916_v32, 0.0  ;;  %v1922_v19 = vpop.eup %1609 }
 0x331   :  { %297 = vadd.xlane.f32.xlu0 %v296_v34  ;;  %v671_v42 = vsel %vm262_vm15, %v1922_v19, 0.0  ;;  %v475_v58 = vmul.f32 1.442695, %v469_v54 }
 0x332   :  { %1611 = vpow2.f32 %v665_v30 }
 0x333   :  { %1613 = vpow2.f32 %v473_v52 }
 0x334   :  { %1547 = vrot.lane.b32.xlu1 %v1808_v48, %s1693_s12  ;;  %1615 = vpow2.f32 %v475_v58 }
 0x336   :  { %v841_v29 = vpop.xlane.xlu2 %840 }
 0x337   :  { %v851_v33 = vsub.f32 %v1873_v51, %v841_v29 }
 0x338   :  { %v1924_v41 = vpop.eup %1611 }
 0x339   :  { %672 = vadd.xlane.f32.xlu0 %v671_v42  ;;  %v674_v44 = vsel %vm262_vm15, %v1924_v41, 0.0  ;;  %v1938_v60 = vpop.eup %1613  ;;  %v855_v63 = vmul.f32 1.442695, %v851_v33 }
 0x33a   :  { %675 = vadd.xlane.f32.xlu2 %v674_v44  ;;  %v482_v62 = vsel %vm262_vm15, %v1938_v60, 0.0  ;;  %v1943_v1 = vpop.eup %1615 }
 0x33b   :  { %1617 = vpow2.f32 %v855_v63  ;;  %v485_v3 = vsel %vm262_vm15, %v1943_v1, 0.0 }
 0x33e   :  { %v844_v50 = vpop.xlane.xlu2 %843 }
 0x33f   :  { %v852_v7 = vsub.f32 %v1877_v53, %v844_v50 }
 0x341   :  { %v1950_v8 = vpop.eup %1617  ;;  %v857_v9 = vmul.f32 1.442695, %v852_v7 }
 0x34a   :  { %v1936_v56 = vpop.xlane.xlu2 %657 }
 0x34d   :  { %1557 = vrot.lane.b32.xlu0 %v1808_v48, %s1694_s13  ;;  %v466_v48 = vpop.xlane.xlu0 %465 }
 0x34e   :  { %v470_v2 = vsub.f32 %v1867_v46, %v466_v48 }
 0x350   :  { %v477_v6 = vmul.f32 1.442695, %v470_v2 }
 0x352   :  { %1552 = vrot.lane.b32.xlu2 %v1805_v47, %s1692_s11  ;;  %v847_v0 = vpop.xlane.xlu2 %846 }
 0x353   :  { %v853_v43 = vsub.f32 %v1889_v59, %v847_v0  ;;  %v863_v59 = vsel %vm262_vm15, %v1950_v8, 0.0 }
 0x355   :  { %v655_v5 = vpop.xlane.xlu0 %654  ;;  %v859_v51 = vmul.f32 1.442695, %v853_v43 }
 0x356   :  { %v661_v10 = vsub.f32 %v1881_v55, %v655_v5 }
 0x357   :  { %1619 = vpow2.f32 %v859_v51 }
 0x358   :  { %1621 = vpow2.f32 %v477_v6  ;;  %v667_v11 = vmul.f32 1.442695, %v661_v10 }
 0x359   :  { %1623 = vpow2.f32 %v857_v9 }
 0x35a   :  { %1625 = vpow2.f32 %v667_v11 }
 0x35d   :  { %v850_v46 = vpop.xlane.xlu0 %849  ;;  %v1956_v15 = vpop.eup %1619 }
 0x35e   :  { %483 = vadd.xlane.f32.xlu1 %v482_v62  ;;  %v854_v13 = vsub.f32 %v1893_v61, %v850_v46  ;;  %v1958_v17 = vpop.eup %1621  ;;  %v869_v18 = vsel %vm262_vm15, %v1956_v15, 0.0 }
 0x35f   :  { %v488_v55 = vsel %vm262_vm15, %v1958_v17, 0.0  ;;  %v1964_v21 = vpop.eup %1623 }
 0x360   :  { %v861_v53 = vmul.f32 1.442695, %v854_v13  ;;  %v866_v61 = vsel %vm262_vm15, %v1964_v21, 0.0  ;;  %v1968_v22 = vpop.eup %1625 }
 0x361   :  { %v677_v23 = vsel %vm262_vm15, %v1968_v22, 0.0 }
 0x362   :  { %1627 = vpow2.f32 %v861_v53 }
 0x366   :  { %486 = vadd.xlane.f32.xlu1 %v485_v3 }
 0x368   :  { %v1972_v24 = vpop.eup %1627 }
 0x369   :  { %v872_v25 = vsel %vm262_vm15, %v1972_v24, 0.0 }
 0x36e   :  { %864 = vadd.xlane.f32.xlu1 %v863_v59 }
 0x376   :  { %870 = vadd.xlane.f32.xlu1 %v869_v18 }
 0x377   :  { %489 = vadd.xlane.f32.xlu0 %v488_v55 }
 0x37b   :  { %867 = vadd.xlane.f32.xlu2 %v866_v61 }
 0x37f   :  { %678 = vadd.xlane.f32.xlu0 %v677_v23 }
 0x383   :  { %873 = vadd.xlane.f32.xlu2 %v872_v25  ;;  %v289_v26 = vpop.xlane.xlu0 %288 }
 0x384   :  { %1629 = vrcp.f32 %v289_v26 }
 0x38a   :  { %v1630_v27 = vpop.eup %1629 }
 0x38b   :  { %v292_v28 = vpop.xlane.xlu2 %291  ;;  %v303_v31 = vmul.f32 %v1630_v27, %v1897_v4 }
 0x38c   :  { %1631 = vrcp.f32 %v292_v28 }
 0x38d   :  { %1459 = vmatmul.msk.f32.vlgmr.msrb.gmra.mxu0 %vm262_vm15, %v303_v31 }
 0x38e   :  { %v295_v30 = vpop.xlane.xlu1 %294 }
 0x38f   :  { %1633 = vrcp.f32 %v295_v30  ;;  %1567 = vrot.lane.b32.xlu1 %v1805_v47, %s1694_s13 }
 0x392   :  { %v1632_v34 = vpop.eup %1631 }
 0x393   :  { %1562 = vrot.lane.b32.xlu0 %v1805_v47, %s1693_s12  ;;  %v304_v42 = vmul.f32 %v1632_v34, %v1901_v12  ;;  %v662_v47 = vsub.f32 %v1885_v57, %v1936_v56 }
 0x394   :  { %v481_v4 = vpop.xlane.xlu0 %480 }
 0x395   :  { %v1634_v44 = vpop.eup %1633  ;;  %1460 = vmatmul.msk.f32.gmra.mxu0 %vm262_vm15, %v304_v42 }
 0x396   :  { %v305_v45 = vmul.f32 %v1634_v44, %v1905_v16  ;;  %v669_v16 = vmul.f32 1.442695, %v662_v47 }
 0x398   :  { %1461 = vmatmul.msk.f32.vlgmr.msra.gmra.mxu3 %vm262_vm15, %v305_v45 }
 0x39b   :  { %1572 = vrot.lane.b32.xlu2 %v1571_v39, %s1695_s14 }
 0x3a4   :  { %v298_v29 = vpop.xlane.xlu0 %297 }
 0x3a5   :  { %1635 = vrcp.f32 %v298_v29 }
 0x3a6   :  { %v1548_v49 = vpop.permute.xlu1 %1547  ;;  %1637 = vrcp.f32 %v481_v4 }
 0x3a7   :  { %v1549_v50 = vunpack.i.l.bf16 %v1548_v49  ;;  %v1550_v52 = vunpack.i.h.bf16 %v1548_v49  ;;  %1639 = vpow2.f32 %v669_v16 }
 0x3a9   :  { %717 = vmatpush.msra.mxu3 %v1549_v50 }
 0x3ab   :  { %v1636_v54 = vpop.eup %1635  ;;  %718 = vmatpush.msra.mxu3 %v1550_v52 }
 0x3ac   :  { %v306_v12 = vmul.f32 %v1636_v54, %v1916_v32  ;;  %v1638_v33 = vpop.eup %1637  ;;  %v673_v0 = vpop.xlane.xlu0 %672 }
 0x3ad   :  { %v676_v58 = vpop.xlane.xlu2 %675  ;;  %v495_v62 = vmul.f32 %v1638_v33, %v1909_v20  ;;  %v1992_v57 = vpop.eup %1639 }
 0x3ae   :  { %1462 = vmatmul.msk.f32.gmra.mxu3 %vm262_vm15, %v306_v12  ;;  %v680_v32 = vsel %vm262_vm15, %v1992_v57, 0.0 }
 0x3b5   :  { %v1553_v48 = vpop.permute.xlu2 %1552 }
 0x3b6   :  { %v1554_v63 = vunpack.i.l.bf16 %v1553_v48  ;;  %1471 = vmatmul.msk.f32.vlgmr.msrb.gmra.mxu3 %vm262_vm15, %v495_v62  ;;  %v1555_v43 = vunpack.i.h.bf16 %v1553_v48 }
 0x3b8   :  { %560 = vmatpush.msra.mxu0 %v1554_v63 }
 0x3ba   :  { %561 = vmatpush.msra.mxu0 %v1555_v43 }
 0x3bd   :  { %681 = vadd.xlane.f32.xlu0 %v680_v32 }
 0x3bf   :  { %v1558_v56 = vpop.permute.xlu0 %1557 }
 0x3c0   :  { %v1559_v2 = vunpack.i.l.bf16 %v1558_v56  ;;  %v1560_v3 = vunpack.i.h.bf16 %v1558_v56 }
 0x3c2   :  { %909 = vmatpush.msrb.mxu3 %v1559_v2 }
 0x3c4   :  { %910 = vmatpush.msrb.mxu3 %v1560_v3 }
 0x3d1   :  { %v484_v20 = vpop.xlane.xlu1 %483  ;;  %1577 = vrot.lane.b32.xlu0 %v1576_v40, %s1695_s14 }
 0x3d2   :  { %1641 = vrcp.f32 %v484_v20 }
 0x3d3   :  { %1643 = vrcp.f32 %v673_v0 }
 0x3d8   :  { %v1642_v5 = vpop.eup %1641 }
 0x3d9   :  { %v487_v51 = vpop.xlane.xlu1 %486  ;;  %v496_v6 = vmul.f32 %v1642_v5, %v1938_v60  ;;  %v1644_v7 = vpop.eup %1643 }
 0x3da   :  { %1645 = vrcp.f32 %v487_v51  ;;  %v687_v35 = vmul.f32 %v1644_v7, %v1922_v19 }
 0x3db   :  { %1472 = vmatmul.msk.f32.gmra.mxu3 %vm262_vm15, %v496_v6  ;;  %1647 = vrcp.f32 %v676_v58 }
 0x3e0   :  { %v1646_v9 = vpop.eup %1645 }
 0x3e1   :  { %v497_v36 = vmul.f32 %v1646_v9, %v1943_v1  ;;  %v865_v37 = vpop.xlane.xlu1 %864  ;;  %v1648_v38 = vpop.eup %1647 }
 0x3e2   :  { %1649 = vrcp.f32 %v865_v37  ;;  %v688_v39 = vmul.f32 %v1648_v38, %v1924_v41 }
 0x3e3   :  { %1473 = vmatmul.msk.f32.vlgmr.msra.gmra.mxu0 %vm262_vm15, %v497_v36  ;;  %1483 = vmatmul.msk.f32.vlgmr.msra.gmra.mxu3 %vm262_vm15, %v687_v35 }
 0x3e8   :  { %v1650_v60 = vpop.eup %1649 }
 0x3e9   :  { %v879_v19 = vmul.f32 %v1650_v60, %v1950_v8  ;;  %v871_v13 = vpop.xlane.xlu1 %870 }
 0x3ea   :  { %v490_v40 = vpop.xlane.xlu0 %489 }
 0x3eb   :  { %1651 = vrcp.f32 %v490_v40  ;;  %1484 = vmatmul.msk.f32.gmra.mxu3 %vm262_vm15, %v688_v39 }
 0x3ee   :  { %v868_v10 = vpop.xlane.xlu2 %867 }
 0x3ef   :  { %1653 = vrcp.f32 %v868_v10 }
 0x3f1   :  { %v1652_v59 = vpop.eup %1651 }
 0x3f2   :  { %v498_v1 = vmul.f32 %v1652_v59, %v1958_v17  ;;  %v679_v41 = vpop.xlane.xlu0 %678 }
 0x3f3   :  { %1495 = vmatmul.msk.f32.vlgmr.msrb.gmra.mxu3 %vm262_vm15, %v879_v19  ;;  %1655 = vrcp.f32 %v679_v41 }
 0x3f4   :  { %1474 = vmatmul.msk.f32.gmra.mxu0 %vm262_vm15, %v498_v1 }
 0x3f5   :  { %v1654_v46 = vpop.eup %1653 }
 0x3f6   :  { %v880_v11 = vmul.f32 %v1654_v46, %v1964_v21 }
 0x3f9   :  { %v1656_v18 = vpop.eup %1655 }
 0x3fa   :  { %v689_v8 = vmul.f32 %v1656_v18, %v1968_v22  ;;  %v874_v22 = vpop.xlane.xlu2 %873 }
 0x3fb   :  { %1496 = vmatmul.msk.f32.gmra.mxu3 %vm262_vm15, %v880_v11 }
 0x401   :  { %v1568_v61 = vpop.permute.xlu1 %1567 }
 0x402   :  { %v1569_v17 = vunpack.i.l.bf16 %v1568_v61  ;;  %v1570_v25 = vunpack.i.h.bf16 %v1568_v61  ;;  %v1573_v58 = vpop.permute.xlu2 %1572 }
 0x403   :  { %v1575_v16 = vunpack.i.h.bf16 %v1573_v58  ;;  %v1574_v33 = vunpack.i.l.bf16 %v1573_v58 }
 0x405   :  { %v1563_v53 = vpop.permute.xlu0 %1562  ;;  %1055 = vmatpush.msra.mxu1 %v1574_v33 }
 0x406   :  { %v1564_v55 = vunpack.i.l.bf16 %v1563_v53  ;;  %v1565_v23 = vunpack.i.h.bf16 %v1563_v53 }
 0x407   :  { %1056 = vmatpush.msra.mxu1 %v1575_v16 }
 0x408   :  { %752 = vmatpush.msrb.mxu0 %v1564_v55  ;;  %v1679_v55 = vld [vmem:[%s2221_s0] sm:$0xff] }
 0x40a   :  { %753 = vmatpush.msrb.mxu0 %v1565_v23  ;;  %v336_v4 = vpop.f32.mrf.mxu0 }
 0x40b   :  { %1485 = vmatmul.msk.f32.vlgmr.msrb.gmra.mxu0 %vm262_vm15, %v689_v8 }
 0x40c   :  { %944 = vmatpush.msra.mxu0 %v1569_v17 }
 0x40e   :  { %945 = vmatpush.msra.mxu0 %v1570_v25  ;;  %v1680_v25 = vld [vmem:[%s2221_s0 + $0x8] sm:$0xff] }
 0x412   :  { %v339_v29 = vpop.f32.mrf.mxu0 }
 0x41b   :  { %v2018_v21 = vpop.f32.mrf.mxu3 }
 0x430   :  { %v682_v26 = vpop.xlane.xlu0 %681 }
 0x431   :  { %1657 = vrcp.f32 %v682_v26  ;;  %v2020_v27 = vpop.f32.mrf.mxu3 }
 0x432   :  { %1659 = vrcp.f32 %v871_v13  ;;  %v1584_v13 = vld [vmem:[%s2222_s1 + $0x84] ss:$0 sm:$0xff] }
 0x433   :  { %1661 = vrcp.f32 %v874_v22 }
 0x437   :  { %v1658_v28 = vpop.eup %1657 }
 0x438   :  { %v690_v31 = vmul.f32 %v1658_v28, %v1992_v57  ;;  %v1660_v34 = vpop.eup %1659 }
 0x439   :  { %v528_v30 = vpop.f32.mrf.mxu3  ;;  %v881_v42 = vmul.f32 %v1660_v34, %v1956_v15  ;;  %v1662_v44 = vpop.eup %1661 }
 0x43a   :  { %957 = vrot.lane.b32.xlu1 %v528_v30, %s1696_s15  ;;  %1486 = vmatmul.msk.f32.gmra.mxu0 %vm262_vm15, %v690_v31  ;;  %v882_v45 = vmul.f32 %v1662_v44, %v1972_v24  ;;  %v1681_v31 = vld [vmem:[%s2221_s0 + $0x10] sm:$0xff]  ;;  %v1682_v44 = vld [vmem:[%s2221_s0 + $0x18] sm:$0xff] }
 0x442   :  { %1497 = vmatmul.msk.f32.vlgmr.msra.gmra.mxu0 %vm262_vm15, %v881_v42 }
 0x443   :  { %v1578_v62 = vpop.permute.xlu0 %1577 }
 0x444   :  { %v1580_v48 = vunpack.i.h.bf16 %v1578_v62  ;;  %v1579_v63 = vunpack.i.l.bf16 %v1578_v62 }
 0x446   :  { %1057 = vmatpush.msra.mxu1 %v1579_v63 }
 0x448   :  { %1058 = vmatpush.msra.mxu1 %v1580_v48 }
 0x44a   :  { %1498 = vmatmul.msk.f32.gmra.mxu0 %vm262_vm15, %v882_v45 }
 0x45e   :  { %v531_v49 = vpop.f32.mrf.mxu3 }
 0x45f   :  { %959 = vrot.lane.b32.xlu2 %v531_v49, %s1696_s15 }
 0x460   :  { %v563_v50 = vpop.f32.mrf.mxu0 }
 0x461   :  { %961 = vrot.lane.b32.xlu0 %v563_v50, %s1696_s15 }
 0x466   :  { %v720_v52 = vpop.f32.mrf.mxu3 }
 0x467   :  { %973 = vrot.lane.b32.xlu1 %v720_v52, %s1697_s16 }
 0x46e   :  { %v723_v54 = vpop.f32.mrf.mxu3 }
 0x471   :  { %v566_v47 = vpop.f32.mrf.mxu0 }
 0x472   :  { %963 = vrot.lane.b32.xlu0 %v566_v47, %s1696_s15 }
 0x476   :  { %v912_v15 = vpop.f32.mrf.mxu3 }
 0x477   :  { %989 = vrot.lane.b32.xlu1 %v912_v15, %s1698_s17 }
 0x47e   :  { %v915_v12 = vpop.f32.mrf.mxu3 }
 0x47f   :  { %975 = vrot.lane.b32.xlu1 %v723_v54, %s1697_s16  ;;  %991 = vrot.lane.b32.xlu2 %v915_v12, %s1698_s17 }
 0x488   :  { %v755_v24 = vpop.f32.mrf.mxu0 }
 0x489   :  { %977 = vrot.lane.b32.xlu1 %v755_v24, %s1697_s16 }
 0x4ac   :  { %v958_v32 = vpop.permute.xlu1 %957 }
 0x4ad   :  { %v1001_v2 = vsel %vm193_vm14, %v336_v4, %v958_v32 }
 0x4b7   :  { %v758_v0 = vpop.f32.mrf.mxu0 }
 0x4b8   :  { %979 = vrot.lane.b32.xlu1 %v758_v0, %s1697_s16 }
 0x4b9   :  { %v960_v5 = vpop.permute.xlu2 %959 }
 0x4ba   :  { %v1002_v6 = vsel %vm193_vm14, %v339_v29, %v960_v5  ;;  %v19_v5 = vld [vmem:[%s2222_s1 + $0x20] sm:$0xff] }
 0x4bf   :  { %v947_v43 = vpop.f32.mrf.mxu0 }
 0x4c0   :  { %993 = vrot.lane.b32.xlu2 %v947_v43, %s1698_s17 }
 0x4c7   :  { %v950_v57 = vpop.f32.mrf.mxu0 }
 0x4c8   :  { %995 = vrot.lane.b32.xlu2 %v950_v57, %s1698_s17 }
 0x4d3   :  { %v962_v37 = vpop.permute.xlu0 %961 }
 0x4d4   :  { %v1003_v39 = vsel %vm193_vm14, %v2018_v21, %v962_v37 }
 0x4d9   :  { %v974_v56 = vpop.permute.xlu1 %973  ;;  %v992_v9 = vpop.permute.xlu2 %991 }
 0x4da   :  { %v1005_v3 = vsel %vm262_vm15, %v1001_v2, %v974_v56  ;;  %v22_v2 = vld [vmem:[%s2222_s1 + $0x38] sm:$0xff] }
 0x4db   :  { %1199 = vmatpush.msra.mxu2 %v22_v2 }
 0x4e4   :  { %v964_v59 = vpop.permute.xlu0 %963 }
 0x4e5   :  { %v1004_v19 = vsel %vm193_vm14, %v2020_v27, %v964_v59 }
 0x4e9   :  { %v990_v20 = vpop.permute.xlu1 %989 }
 0x4ea   :  { %v1010_v51 = vsel %vm1009_vm1, %v1005_v3, %v990_v20  ;;  %v21_v3 = vld [vmem:[%s2222_s1 + $0x30] sm:$0xff]  ;;  %v20_v20 = vld [vmem:[%s2222_s1 + $0x28] sm:$0xff] }
 0x4eb   :  { %1499 = vmatmul.msk.f32.vlgmr.msra.gmra.mxu1 %vm39_vm0, %v1010_v51  ;;  %1200 = vmatpush.msra.mxu2 %v21_v3 }
 0x4ed   :  { %1201 = vmatpush.msra.mxu2 %v20_v20 }
 0x4ef   :  { %1202 = vmatpush.msra.mxu2 %v19_v5 }
 0x4f1   :  { %v976_v7 = vpop.permute.xlu1 %975 }
 0x4f2   :  { %v1006_v35 = vsel %vm262_vm15, %v1002_v6, %v976_v7 }
 0x4f3   :  { %v1011_v36 = vsel %vm1009_vm1, %v1006_v35, %v992_v9 }
 0x4f4   :  { %1500 = vmatmul.msk.f32.gmra.mxu1 %vm39_vm0, %v1011_v36 }
 0x4fb   :  { %v978_v38 = vpop.permute.xlu1 %977 }
 0x4fc   :  { %v1007_v40 = vsel %vm262_vm15, %v1003_v39, %v978_v38 }
 0x51a   :  { %v994_v60 = vpop.permute.xlu2 %993 }
 0x51b   :  { %v1012_v10 = vsel %vm1009_vm1, %v1007_v40, %v994_v60 }
 0x51c   :  { %1501 = vmatmul.msk.f32.gmra.mxu1 %vm39_vm0, %v1012_v10 }
 0x522   :  { %v996_v46 = vpop.permute.xlu2 %995 }
 0x52a   :  { %v980_v1 = vpop.permute.xlu1 %979 }
 0x52b   :  { %v1008_v11 = vsel %vm262_vm15, %v1004_v19, %v980_v1  ;;  %v1585_v19 = vld [vmem:[%s2222_s1 + $0x82] ss:$0 sm:$0xff] }
 0x52c   :  { %v1013_v41 = vsel %vm1009_vm1, %v1008_v11, %v996_v46 }
 0x52d   :  { %1502 = vmatmul.msk.f32.gmra.mxu1 %vm39_vm0, %v1013_v41 }
 0x568   :  { %v1060_v53 = vpop.f32.mrf.mxu1 }
 0x569   :  { %v1061_v18 = vadd.f32 %v1584_v13, %v1060_v53 }
 0x56b   :  { %v2052_v61 = vadd.f32 %v1679_v55, %v1061_v18 }
 0x56d   :  { %v1076_v23 = vsel %vm39_vm0, %v2052_v61, 0.0 }
 0x56e   :  { %1077 = vadd.xlane.f32.xlu0 %v1076_v23 }
 0x571   :  { %v1063_v8 = vpop.f32.mrf.mxu1 }
 0x572   :  { %v1064_v17 = vadd.f32 %v1584_v13, %v1063_v8 }
 0x574   :  { %v2059_v21 = vadd.f32 %v1680_v25, %v1064_v17 }
 0x576   :  { %v1079_v26 = vsel %vm39_vm0, %v2059_v21, 0.0 }
 0x577   :  { %1080 = vadd.xlane.f32.xlu1 %v1079_v26 }
 0x599   :  { %v1066_v27 = vpop.f32.mrf.mxu1 }
 0x59a   :  { %v1067_v28 = vadd.f32 %v1584_v13, %v1066_v27 }
 0x59c   :  { %v2066_v30 = vadd.f32 %v1681_v31, %v1067_v28 }
 0x59e   :  { %v1082_v22 = vsel %vm39_vm0, %v2066_v30, 0.0 }
 0x59f   :  { %1083 = vadd.xlane.f32.xlu2 %v1082_v22 }
 0x5aa   :  { %v1069_v34 = vpop.f32.mrf.mxu1 }
 0x5ab   :  { %v1070_v42 = vadd.f32 %v1584_v13, %v1069_v34  ;;  %v1586_v13 = vld [vmem:[%s2222_s1 + $0x83] ss:$0 sm:$0xff] }
 0x5ad   :  { %v2073_v45 = vadd.f32 %v1682_v44, %v1070_v42 }
 0x5af   :  { %v1085_v4 = vsel %vm39_vm0, %v2073_v45, 0.0 }
 0x5b0   :  { %1086 = vadd.xlane.f32.xlu0 %v1085_v4 }
 0x5e1   :  { %v1078_v29 = vpop.xlane.xlu0 %1077 }
 0x5e2   :  { %v1088_v49 = vmul.f32 %v1078_v29, %v1730_v14 }
 0x5e4   :  { %v1092_v50 = vsub.f32 %v2052_v61, %v1088_v49 }
 0x5e6   :  { %v1096_v52 = vmul.f32 %v1092_v50, %v1092_v50 }
 0x5e8   :  { %v1100_v54 = vsel %vm39_vm0, %v1096_v52, 0.0 }
 0x5e9   :  { %1101 = vadd.xlane.f32.xlu1 %v1100_v54 }
 0x5ea   :  { %v1081_v47 = vpop.xlane.xlu1 %1080 }
 0x5eb   :  { %v1089_v15 = vmul.f32 %v1081_v47, %v1730_v14 }
 0x5ed   :  { %v1093_v12 = vsub.f32 %v2059_v21, %v1089_v15 }
 0x5ef   :  { %v1097_v24 = vmul.f32 %v1093_v12, %v1093_v12 }
 0x5f1   :  { %v1103_v58 = vsel %vm39_vm0, %v1097_v24, 0.0 }
 0x5f2   :  { %1104 = vadd.xlane.f32.xlu2 %v1103_v58 }
 0x612   :  { %v1084_v16 = vpop.xlane.xlu2 %1083 }
 0x613   :  { %v1090_v33 = vmul.f32 %v1084_v16, %v1730_v14 }
 0x615   :  { %v2085_v62 = vsub.f32 %v2066_v30, %v1090_v33 }
 0x617   :  { %v1098_v48 = vmul.f32 %v2085_v62, %v2085_v62 }
 0x619   :  { %v1106_v63 = vsel %vm39_vm0, %v1098_v48, 0.0 }
 0x61a   :  { %1107 = vadd.xlane.f32.xlu0 %v1106_v63 }
 0x623   :  { %v1087_v0 = vpop.xlane.xlu0 %1086 }
 0x624   :  { %v1091_v43 = vmul.f32 %v1087_v0, %v1730_v14 }
 0x626   :  { %v2092_v57 = vsub.f32 %v2073_v45, %v1091_v43 }
 0x628   :  { %v1099_v32 = vmul.f32 %v2092_v57, %v2092_v57 }
 0x62a   :  { %v1109_v56 = vsel %vm39_vm0, %v1099_v32, 0.0 }
 0x62b   :  { %1110 = vadd.xlane.f32.xlu1 %v1109_v56 }
 0x65c   :  { %v1102_v51 = vpop.xlane.xlu1 %1101 }
 0x65d   :  { %v1112_v6 = vmul.f32 %v1102_v51, %v1730_v14  ;;  %v30_v51 = vld [vmem:[%s2222_s1 + $0x78] sm:$0xff] }
 0x65e   :  { %1414 = vmatpush.msra.mxu3 %v30_v51 }
 0x65f   :  { %v1116_v7 = vadd.f32 1e-05, %v1112_v6 }
 0x661   :  { %1663 = vrsqrt.f32 %v1116_v7  ;;  %vm1126_vm3 = vweird.f32 %v1116_v7 }
 0x665   :  { %v1105_v9 = vpop.xlane.xlu2 %1104 }
 0x666   :  { %v1113_v35 = vmul.f32 %v1105_v9, %v1730_v14 }
 0x667   :  { %v1664_v36 = vpop.eup %1663 }
 0x668   :  { %v1121_v37 = vmul.f32 %v1664_v36, %v1116_v7  ;;  %v1117_v38 = vadd.f32 1e-05, %v1113_v35  ;;  %vm1127_vm2 = vweird.f32 %v1664_v36  ;;  %v29_v35 = vld [vmem:[%s2222_s1 + $0x70] sm:$0xff] }
 0x669   :  { %vm1128_vm4 = vmor %vm1126_vm3, %vm1127_vm2  ;;  %1415 = vmatpush.msra.mxu3 %v29_v35 }
 0x66a   :  { %v1122_v39 = vmul.f32 %v1664_v36, %v1121_v37  ;;  %1665 = vrsqrt.f32 %v1117_v38  ;;  %vm1136_vm6 = vweird.f32 %v1117_v38 }
 0x66c   :  { %v1123_v40 = vmul.f32 0.5, %v1122_v39  ;;  %v28_v39 = vld [vmem:[%s2222_s1 + $0x68] sm:$0xff] }
 0x66d   :  { %1416 = vmatpush.msra.mxu3 %v28_v39 }
 0x66e   :  { %v1124_v60 = vsub.f32 1.5, %v1123_v40 }
 0x670   :  { %v1666_v10 = vpop.eup %1665  ;;  %v1125_v59 = vmul.f32 %v1664_v36, %v1124_v60 }
 0x671   :  { %v1131_v1 = vmul.f32 %v1666_v10, %v1117_v38  ;;  %vm1137_vm5 = vweird.f32 %v1666_v10 }
 0x672   :  { %v1129_v46 = vsel %vm1128_vm4, %v1664_v36, %v1125_v59  ;;  %vm1138_vm7 = vmor %vm1136_vm6, %vm1137_vm5  ;;  %v27_v59 = vld [vmem:[%s2222_s1 + $0x60] sm:$0xff]  ;;  %vm1393_vm5 = vcmask 523264  }
 0x673   :  { %v1160_v11 = vmul.f32 %v1129_v46, %v1092_v50  ;;  %v1132_v41 = vmul.f32 %v1666_v10, %v1131_v1  ;;  %1417 = vmatpush.msra.mxu3 %v27_v59  ;;  %v26_v46 = vld [vmem:[%s2222_s1 + $0x58] sm:$0xff] }
 0x675   :  { %v1165_v53 = vmul.f32 %v1585_v19, %v1160_v11  ;;  %v1133_v18 = vmul.f32 0.5, %v1132_v41  ;;  %1418 = vmatpush.msra.mxu3 %v26_v46 }
 0x677   :  { %v1134_v55 = vsub.f32 1.5, %v1133_v18  ;;  %v1170_v23 = vadd.f32 %v1586_v13, %v1165_v53  ;;  %v25_v53 = vld [vmem:[%s2222_s1 + $0x50] sm:$0xff] }
 0x678   :  { %1419 = vmatpush.msra.mxu3 %v25_v53 }
 0x679   :  { %v1135_v8 = vmul.f32 %v1666_v10, %v1134_v55  ;;  %1503 = vmatmul.msk.f32.vlgmr.msra.gmra.mxu2 %vm39_vm0, %v1170_v23 }
 0x67b   :  { %v1139_v17 = vsel %vm1138_vm7, %v1666_v10, %v1135_v8  ;;  %v24_v8 = vld [vmem:[%s2222_s1 + $0x48] sm:$0xff] }
 0x67c   :  { %v1161_v25 = vmul.f32 %v1139_v17, %v1093_v12  ;;  %1420 = vmatpush.msra.mxu3 %v24_v8 }
 0x67e   :  { %v1166_v26 = vmul.f32 %v1585_v19, %v1161_v25 }
 0x680   :  { %v1171_v27 = vadd.f32 %v1586_v13, %v1166_v26 }
 0x682   :  { %1504 = vmatmul.msk.f32.gmra.mxu2 %vm39_vm0, %v1171_v27 }
 0x68d   :  { %v1108_v28 = vpop.xlane.xlu0 %1107 }
 0x68e   :  { %v1114_v31 = vmul.f32 %v1108_v28, %v1730_v14  ;;  %v23_v28 = vld [vmem:[%s2222_s1 + $0x40] sm:$0xff] }
 0x68f   :  { %1421 = vmatpush.msra.mxu3 %v23_v28 }
 0x690   :  { %v1118_v22 = vadd.f32 1e-05, %v1114_v31 }
 0x692   :  { %1667 = vrsqrt.f32 %v1118_v22  ;;  %vm1146_vm9 = vweird.f32 %v1118_v22 }
 0x698   :  { %v1668_v34 = vpop.eup %1667 }
 0x699   :  { %v1141_v42 = vmul.f32 %v1668_v34, %v1118_v22  ;;  %vm1147_vm8 = vweird.f32 %v1668_v34 }
 0x69a   :  { %vm1148_vm10 = vmor %vm1146_vm9, %vm1147_vm8 }
 0x69b   :  { %v1142_v44 = vmul.f32 %v1668_v34, %v1141_v42 }
 0x69d   :  { %v1143_v4 = vmul.f32 0.5, %v1142_v44 }
 0x69e   :  { %v1111_v29 = vpop.xlane.xlu1 %1110 }
 0x69f   :  { %v1144_v49 = vsub.f32 1.5, %v1143_v4  ;;  %v1115_v50 = vmul.f32 %v1111_v29, %v1730_v14 }
 0x6a1   :  { %v1145_v52 = vmul.f32 %v1668_v34, %v1144_v49  ;;  %v1119_v54 = vadd.f32 1e-05, %v1115_v50 }
 0x6a3   :  { %v1149_v47 = vsel %vm1148_vm10, %v1668_v34, %v1145_v52  ;;  %1669 = vrsqrt.f32 %v1119_v54  ;;  %vm1156_vm12 = vweird.f32 %v1119_v54 }
 0x6a4   :  { %v1162_v15 = vmul.f32 %v1149_v47, %v2085_v62  ;;  %v2128_v62 = vld [vmem:[%s2222_s1 + $0x86] ss:$0 sm:$0xff] }
 0x6a6   :  { %v1167_v12 = vmul.f32 %v1585_v19, %v1162_v15 }
 0x6a8   :  { %v1172_v24 = vadd.f32 %v1586_v13, %v1167_v12 }
 0x6a9   :  { %v1670_v58 = vpop.eup %1669 }
 0x6aa   :  { %v1151_v16 = vmul.f32 %v1670_v58, %v1119_v54  ;;  %1505 = vmatmul.msk.f32.gmra.mxu2 %vm39_vm0, %v1172_v24  ;;  %vm1157_vm11 = vweird.f32 %v1670_v58 }
 0x6ab   :  { %vm1158_vm13 = vmor %vm1156_vm12, %vm1157_vm11 }
 0x6ac   :  { %v1152_v33 = vmul.f32 %v1670_v58, %v1151_v16 }
 0x6ae   :  { %v1153_v48 = vmul.f32 0.5, %v1152_v33 }
 0x6b0   :  { %v1154_v63 = vsub.f32 1.5, %v1153_v48 }
 0x6b2   :  { %v1155_v0 = vmul.f32 %v1670_v58, %v1154_v63 }
 0x6b4   :  { %v1159_v14 = vsel %vm1158_vm13, %v1670_v58, %v1155_v0 }
 0x6b5   :  { %v1163_v43 = vmul.f32 %v1159_v14, %v2092_v57 }
 0x6b7   :  { %v1168_v32 = vmul.f32 %v1585_v19, %v1163_v43 }
 0x6b9   :  { %v1173_v56 = vadd.f32 %v1586_v13, %v1168_v32 }
 0x6bb   :  { %1506 = vmatmul.msk.f32.gmra.mxu2 %vm39_vm0, %v1173_v56 }
 0x6fc   :  { %v1204_v2 = vpop.f32.mrf.mxu2 }
 0x6fd   :  { %v2131_v3 = vadd.f32 %v2128_v62, %v1204_v2 }
 0x6ff   :  { %v2134_v20 = vmul.f32 0.70710677, %v2131_v3  ;;  %v1216_v53 = vmul.f32 0.5, %v2131_v3 }
 0x701   :  { %v1224_v5 = vmul.f32 %v2134_v20, %v2134_v20 }
 0x703   :  { %v1225_v57 = vmin.f32 %v1224_v5, 16.0 }
 0x705   :  { %v1226_v6 = vmul.f32 2.1237322e-06, %v1225_v57  ;;  %v1237_v7 = vmul.f32 3.8918573e-05, %v1225_v57  ;;  %v1207_v9 = vpop.f32.mrf.mxu2 }
 0x706   :  { %v2145_v36 = vadd.f32 %v2128_v62, %v1207_v9 }
 0x707   :  { %v1227_v37 = vadd.f32 0.00028619796, %v1226_v6  ;;  %v1238_v38 = vadd.f32 0.001143296, %v1237_v7 }
 0x708   :  { %v2151_v40 = vmul.f32 0.70710677, %v2145_v36 }
 0x709   :  { %v1228_v60 = vmul.f32 %v1227_v37, %v1225_v57  ;;  %v1239_v10 = vmul.f32 %v1238_v38, %v1225_v57 }
 0x70a   :  { %v1264_v19 = vmul.f32 %v2151_v40, %v2151_v40 }
 0x70b   :  { %v1240_v1 = vadd.f32 0.014752088, %v1239_v10  ;;  %v1229_v11 = vadd.f32 0.0036580483, %v1228_v60 }
 0x70c   :  { %v1265_v41 = vmin.f32 %v1264_v19, 16.0 }
 0x70d   :  { %v1241_v13 = vmul.f32 %v1240_v1, %v1225_v57  ;;  %v1230_v17 = vmul.f32 %v1229_v11, %v1225_v57 }
 0x70e   :  { %v1266_v18 = vmul.f32 2.1237322e-06, %v1265_v41  ;;  %v1277_v55 = vmul.f32 3.8918573e-05, %v1265_v41 }
 0x70f   :  { %v1242_v23 = vadd.f32 0.112945676, %v1241_v13  ;;  %v1231_v42 = vadd.f32 0.05243302, %v1230_v17 }
 0x710   :  { %v1267_v25 = vadd.f32 0.00028619796, %v1266_v18  ;;  %v1278_v26 = vadd.f32 0.001143296, %v1277_v55 }
 0x711   :  { %v1243_v27 = vmul.f32 %v1242_v23, %v1225_v57  ;;  %v1232_v52 = vmul.f32 %v1231_v42, %v1225_v57  ;;  %v1217_v42 = vmul.f32 0.5, %v2145_v36 }
 0x712   :  { %v1268_v31 = vmul.f32 %v1267_v25, %v1265_v41  ;;  %v1279_v22 = vmul.f32 %v1278_v26, %v1265_v41 }
 0x713   :  { %v1244_v34 = vadd.f32 0.4994258, %v1243_v27  ;;  %v1233_v12 = vadd.f32 0.18741608, %v1232_v52 }
 0x714   :  { %v1280_v44 = vadd.f32 0.014752088, %v1279_v22  ;;  %v1269_v29 = vadd.f32 0.0036580483, %v1268_v31 }
 0x715   :  { %v1245_v4 = vmul.f32 %v1244_v34, %v1225_v57  ;;  %v1234_v48 = vmul.f32 %v1233_v12, %v1225_v57 }
 0x716   :  { %v1281_v49 = vmul.f32 %v1280_v44, %v1265_v41  ;;  %v1270_v47 = vmul.f32 %v1269_v29, %v1265_v41 }
 0x717   :  { %v1246_v50 = vadd.f32 1.0, %v1245_v4  ;;  %v1235_v56 = vadd.f32 1.1283791, %v1234_v48 }
 0x718   :  { %v1282_v54 = vadd.f32 0.112945676, %v1281_v49  ;;  %v1271_v58 = vadd.f32 0.05243302, %v1270_v47 }
 0x719   :  { %1671 = vrcp.f32 %v1246_v50  ;;  %v1258_v32 = vand.u32 2147483648, %v1246_v50  ;;  %v1256_v5 = vand.u32 2147483647, %v1246_v50  ;;  %vm1252_vm15 = vweird.f32 %v1246_v50 }
 0x71a   :  { %v1283_v15 = vmul.f32 %v1282_v54, %v1265_v41  ;;  %v1272_v14 = vmul.f32 %v1271_v58, %v1265_v41  ;;  %v1236_v35 = vmul.f32 %v1235_v56, %v2134_v20 }
 0x71b   :  { %v1259_v7 = vor.u32 1.1754944e-38, %v1258_v32  ;;  %vm1257_vm2 = vcmp.eq.f32.partialorder %v1256_v5, 8.507059e+37 }
 0x71c   :  { %v1284_v24 = vadd.f32 0.4994258, %v1283_v15  ;;  %v1273_v51 = vadd.f32 0.18741608, %v1272_v14 }
 0x71e   :  { %v1285_v16 = vmul.f32 %v1284_v24, %v1265_v41  ;;  %v1274_v38 = vmul.f32 %v1273_v51, %v1265_v41 }
 0x71f   :  { %v1672_v33 = vpop.eup %1671 }
 0x720   :  { %v1248_v63 = vmul.f32 %v1672_v33, %v1246_v50  ;;  %v1286_v0 = vadd.f32 1.0, %v1285_v16  ;;  %vm1253_vm14 = vweird.f32 %v1672_v33  ;;  %v1275_v1 = vadd.f32 1.1283791, %v1274_v38 }
 0x721   :  { %vm1254_vm1 = vmor %vm1252_vm15, %vm1253_vm14 }
 0x722   :  { %v1249_v43 = vsub.f32 1.0, %v1248_v63  ;;  %1673 = vrcp.f32 %v1286_v0  ;;  %v1298_v19 = vand.u32 2147483648, %v1286_v0  ;;  %v1296_v11 = vand.u32 2147483647, %v1286_v0 }
 0x723   :  { %vm1292_vm4 = vweird.f32 %v1286_v0  ;;  %v1276_v17 = vmul.f32 %v1275_v1, %v2151_v40 }
 0x724   :  { %v1250_v2 = vmul.f32 %v1672_v33, %v1249_v43  ;;  %v1299_v23 = vor.u32 1.1754944e-38, %v1298_v19  ;;  %vm1297_vm7 = vcmp.eq.f32.partialorder %v1296_v11, 8.507059e+37 }
 0x726   :  { %v1251_v6 = vadd.f32 %v1672_v33, %v1250_v2 }
 0x728   :  { %v1674_v9 = vpop.eup %1673  ;;  %v1255_v37 = vsel %vm1254_vm1, %v1672_v33, %v1251_v6 }
 0x729   :  { %v1260_v57 = vsel %vm1257_vm2, %v1259_v7, %v1255_v37  ;;  %v1288_v39 = vmul.f32 %v1674_v9, %v1286_v0  ;;  %vm1293_vm3 = vweird.f32 %v1674_v9 }
 0x72a   :  { %v1261_v60 = vmul.f32 %v1260_v57, %v1236_v35  ;;  %vm1294_vm6 = vmor %vm1292_vm4, %vm1293_vm3 }
 0x72b   :  { %v1289_v10 = vsub.f32 1.0, %v1288_v39 }
 0x72c   :  { %v1507_v59 = vclamps-f32 %v1261_v60, 1.0 }
 0x72d   :  { %v1290_v46 = vmul.f32 %v1674_v9, %v1289_v10  ;;  %v1210_v13 = vpop.f32.mrf.mxu2 }
 0x72e   :  { %v1384_v18 = vadd.f32 1.0, %v1507_v59  ;;  %v2173_v55 = vadd.f32 %v2128_v62, %v1210_v13 }
 0x72f   :  { %v1291_v20 = vadd.f32 %v1674_v9, %v1290_v46 }
 0x730   :  { %v1388_v41 = vmul.f32 %v1384_v18, %v1216_v53  ;;  %v2176_v8 = vmul.f32 0.70710677, %v2173_v55 }
 0x731   :  { %v1295_v25 = vsel %vm1294_vm6, %v1674_v9, %v1291_v20 }
 0x732   :  { %v1300_v26 = vsel %vm1297_vm7, %v1299_v23, %v1295_v25  ;;  %v1304_v3 = vmul.f32 %v2176_v8, %v2176_v8  ;;  %1511 = vmatmul.msk.f32.vlgmr.msra.gmra.mxu3 %vm1393_vm5, %v1388_v41 }
 0x733   :  { %v1301_v27 = vmul.f32 %v1300_v26, %v1276_v17 }
 0x734   :  { %v1305_v28 = vmin.f32 %v1304_v3, 16.0 }
 0x735   :  { %v1508_v31 = vclamps-f32 %v1301_v27, 1.0 }
 0x736   :  { %v1306_v22 = vmul.f32 2.1237322e-06, %v1305_v28  ;;  %v1317_v34 = vmul.f32 3.8918573e-05, %v1305_v28 }
 0x737   :  { %v1385_v44 = vadd.f32 1.0, %v1508_v31 }
 0x738   :  { %v1307_v4 = vadd.f32 0.00028619796, %v1306_v22  ;;  %v1318_v29 = vadd.f32 0.001143296, %v1317_v34  ;;  %v1218_v34 = vmul.f32 0.5, %v2173_v55 }
 0x739   :  { %v1389_v49 = vmul.f32 %v1385_v44, %v1217_v42 }
 0x73a   :  { %v1308_v40 = vmul.f32 %v1307_v4, %v1305_v28  ;;  %v1319_v50 = vmul.f32 %v1318_v29, %v1305_v28 }
 0x73b   :  { %1512 = vmatmul.msk.f32.gmra.mxu3 %vm1393_vm5, %v1389_v49 }
 0x73c   :  { %v1309_v52 = vadd.f32 0.0036580483, %v1308_v40  ;;  %v1320_v54 = vadd.f32 0.014752088, %v1319_v50 }
 0x73e   :  { %v1321_v47 = vmul.f32 %v1320_v54, %v1305_v28  ;;  %v1213_v15 = vpop.f32.mrf.mxu2  ;;  %v1310_v24 = vmul.f32 %v1309_v52, %v1305_v28 }
 0x73f   :  { %v2185_v12 = vadd.f32 %v2128_v62, %v1213_v15 }
 0x740   :  { %v1322_v58 = vadd.f32 0.112945676, %v1321_v47  ;;  %v1311_v48 = vadd.f32 0.05243302, %v1310_v24 }
 0x741   :  { %v2188_v16 = vmul.f32 0.70710677, %v2185_v12 }
 0x742   :  { %v1323_v36 = vmul.f32 %v1322_v58, %v1305_v28  ;;  %v1312_v56 = vmul.f32 %v1311_v48, %v1305_v28  ;;  %v1219_v48 = vmul.f32 0.5, %v2185_v12 }
 0x743   :  { %v1344_v33 = vmul.f32 %v2188_v16, %v2188_v16 }
 0x744   :  { %v1324_v63 = vadd.f32 0.4994258, %v1323_v36  ;;  %v1313_v7 = vadd.f32 0.18741608, %v1312_v56 }
 0x745   :  { %v1345_v0 = vmin.f32 %v1344_v33, 16.0 }
 0x746   :  { %v1325_v14 = vmul.f32 %v1324_v63, %v1305_v28  ;;  %v1314_v38 = vmul.f32 %v1313_v7, %v1305_v28 }
 0x747   :  { %v1346_v43 = vmul.f32 2.1237322e-06, %v1345_v0  ;;  %v1357_v32 = vmul.f32 3.8918573e-05, %v1345_v0 }
 0x748   :  { %v1326_v2 = vadd.f32 1.0, %v1325_v14  ;;  %v1315_v1 = vadd.f32 1.1283791, %v1314_v38  ;;  %v1588_v14 = vld [vmem:[%s2222_s1 + $0x85] ss:$0 sm:$0xff] }
 0x749   :  { %v1347_v5 = vadd.f32 0.00028619796, %v1346_v43  ;;  %v1358_v62 = vadd.f32 0.001143296, %v1357_v32 }
 0x74a   :  { %1675 = vrcp.f32 %v1326_v2  ;;  %v1338_v46 = vand.u32 2147483648, %v1326_v2  ;;  %v1336_v13 = vand.u32 2147483647, %v1326_v2  ;;  %vm1332_vm9 = vweird.f32 %v1326_v2 }
 0x74b   :  { %v1348_v51 = vmul.f32 %v1347_v5, %v1345_v0  ;;  %v1359_v6 = vmul.f32 %v1358_v62, %v1345_v0  ;;  %v1316_v17 = vmul.f32 %v1315_v1, %v2176_v8 }
 0x74c   :  { %v1339_v23 = vor.u32 1.1754944e-38, %v1338_v46  ;;  %vm1337_vm11 = vcmp.eq.f32.partialorder %v1336_v13, 8.507059e+37 }
 0x74d   :  { %v1360_v9 = vadd.f32 0.014752088, %v1359_v6  ;;  %v1349_v35 = vadd.f32 0.0036580483, %v1348_v51 }
 0x74f   :  { %v1361_v37 = vmul.f32 %v1360_v9, %v1345_v0  ;;  %v1350_v10 = vmul.f32 %v1349_v35, %v1345_v0 }
 0x750   :  { %v1676_v57 = vpop.eup %1675 }
 0x751   :  { %v1328_v39 = vmul.f32 %v1676_v57, %v1326_v2  ;;  %v1362_v60 = vadd.f32 0.112945676, %v1361_v37  ;;  %vm1333_vm8 = vweird.f32 %v1676_v57  ;;  %v1351_v18 = vadd.f32 0.05243302, %v1350_v10 }
 0x752   :  { %vm1334_vm10 = vmor %vm1332_vm9, %vm1333_vm8 }
 0x753   :  { %v1329_v59 = vsub.f32 1.0, %v1328_v39  ;;  %v1363_v19 = vmul.f32 %v1362_v60, %v1345_v0  ;;  %v1352_v27 = vmul.f32 %v1351_v18, %v1345_v0 }
 0x755   :  { %v1330_v11 = vmul.f32 %v1676_v57, %v1329_v59  ;;  %v1364_v53 = vadd.f32 0.4994258, %v1363_v19  ;;  %v1353_v22 = vadd.f32 0.18741608, %v1352_v27 }
 0x757   :  { %v1331_v20 = vadd.f32 %v1676_v57, %v1330_v11  ;;  %v1365_v41 = vmul.f32 %v1364_v53, %v1345_v0  ;;  %v1354_v29 = vmul.f32 %v1353_v22, %v1345_v0 }
 0x759   :  { %v1335_v25 = vsel %vm1334_vm10, %v1676_v57, %v1331_v20  ;;  %v1366_v26 = vadd.f32 1.0, %v1365_v41  ;;  %v1355_v50 = vadd.f32 1.1283791, %v1354_v29 }
 0x75a   :  { %v1340_v3 = vsel %vm1337_vm11, %v1339_v23, %v1335_v25 }
 0x75b   :  { %v1341_v28 = vmul.f32 %v1340_v3, %v1316_v17  ;;  %1677 = vrcp.f32 %v1366_v26  ;;  %v1378_v8 = vand.u32 2147483648, %v1366_v26  ;;  %v1376_v54 = vand.u32 2147483647, %v1366_v26 }
 0x75c   :  { %vm1372_vm13 = vweird.f32 %v1366_v26  ;;  %v1356_v24 = vmul.f32 %v1355_v50, %v2188_v16 }
 0x75d   :  { %v1509_v31 = vclamps-f32 %v1341_v28, 1.0  ;;  %v1379_v15 = vor.u32 1.1754944e-38, %v1378_v8  ;;  %vm1377_vm15 = vcmp.eq.f32.partialorder %v1376_v54, 8.507059e+37 }
 0x75f   :  { %v1386_v42 = vadd.f32 1.0, %v1509_v31 }
 0x761   :  { %v1678_v44 = vpop.eup %1677  ;;  %v1390_v4 = vmul.f32 %v1386_v42, %v1218_v34 }
 0x762   :  { %v1368_v49 = vmul.f32 %v1678_v44, %v1366_v26  ;;  %vm1373_vm12 = vweird.f32 %v1678_v44 }
 0x763   :  { %1513 = vmatmul.msk.f32.gmra.mxu3 %vm1393_vm5, %v1390_v4  ;;  %vm1374_vm14 = vmor %vm1372_vm13, %vm1373_vm12 }
 0x764   :  { %v1369_v40 = vsub.f32 1.0, %v1368_v49 }
 0x766   :  { %v1370_v52 = vmul.f32 %v1678_v44, %v1369_v40 }
 0x768   :  { %v1371_v47 = vadd.f32 %v1678_v44, %v1370_v52 }
 0x76a   :  { %v1375_v55 = vsel %vm1374_vm14, %v1678_v44, %v1371_v47 }
 0x76b   :  { %v1380_v58 = vsel %vm1377_vm15, %v1379_v15, %v1375_v55 }
 0x76c   :  { %v1381_v36 = vmul.f32 %v1380_v58, %v1356_v24 }
 0x76e   :  { %v1510_v33 = vclamps-f32 %v1381_v36, 1.0 }
 0x770   :  { %v1387_v63 = vadd.f32 1.0, %v1510_v33 }
 0x772   :  { %v1391_v0 = vmul.f32 %v1387_v63, %v1219_v48 }
 0x774   :  { %1514 = vmatmul.msk.f32.gmra.mxu3 %vm1393_vm5, %v1391_v0 }
 0x7b5   :  { %v1423_v43 = vpop.f32.mrf.mxu3 }
 0x7b6   :  { %v1424_v32 = vadd.f32 %v1588_v14, %v1423_v43 }
 0x7b8   :  { %v1435_v56 = vadd.f32 %v1424_v32, %v2052_v61 }
 0x7ba   :  { %1439 = vst.msk [vmem:[%s2223_s2] sm:$0xff] %vm39_vm0, %v1435_v56 }
 0x7be   :  { %v1426_v16 = vpop.f32.mrf.mxu3 }
 0x7bf   :  { %v1427_v2 = vadd.f32 %v1588_v14, %v1426_v16 }
 0x7c1   :  { %v1436_v12 = vadd.f32 %v1427_v2, %v2059_v21 }
 0x7c3   :  { %1440 = vst.msk [vmem:[%s2223_s2 + $0x8] sm:$0xff] %vm39_vm0, %v1436_v12 }
 0x7e6   :  { %v1429_v5 = vpop.f32.mrf.mxu3 }
 0x7e7   :  { %v1430_v62 = vadd.f32 %v1588_v14, %v1429_v5 }
 0x7e9   :  { %v1437_v51 = vadd.f32 %v1430_v62, %v2066_v30 }
 0x7eb   :  { %1441 = vst.msk [vmem:[%s2223_s2 + $0x10] sm:$0xff] %vm39_vm0, %v1437_v51 }
 0x7f7   :  { %v1432_v61 = vpop.f32.mrf.mxu3 }
 0x7f8   :  { %v1433_v6 = vadd.f32 %v1588_v14, %v1432_v61 }
 0x7fa   :  { %v1438_v7 = vadd.f32 %v1433_v6, %v2073_v45 }
 0x7fc   :  { %1442 = vst.msk [vmem:[%s2223_s2 + $0x18] sm:$0xff] %vm39_vm0, %v1438_v7 }

</bundles_post_ra>
